<compile_context>
chip_gen: v7x
topology: tpu7x:2x2x1
jax: 0.10.0
libtpu: 0.0.40
codegen_flags: <defaults>
</compile_context>

<pallas_src>
import numpy as np
import jax
import jax.numpy as jnp
from jax.experimental import pallas as pl
from jax.experimental.pallas import tpu as pltpu

# ---- config (mirrors the fields DOSE1d reads from `config`) ----------------
STATE_DIM = 4        # config.ood_scoring.state_dim
N_COMPONENTS = 4     # config.ood_scoring.made_components
HIDDEN_DIM = 32      # config.ood_scoring.made_hidden_dim
N_BLOCKS = 2         # config.ood_scoring.made_residual_blocks
COND_DIM = 8         # config.data.dimension (conditioning input `mask`)
MIN_SCALE = 1e-3     # config.ood_scoring.gaussian_min_scale

_HALF_LOG_2PI = 0.5 * float(np.log(2.0 * np.pi))
_DPAD = 8            # state dims padded to 8 rows per component slab (sublane alignment)

_PARAM_ORDER = ("win_t", "b_in", "bw1_t", "bb1_t", "bw2_t", "bb2_t", "wf_t", "bf_t")


def _softplus(x):
    # matches F.softplus (beta=1, threshold=20)
    return jnp.where(x > 20.0, x, jnp.log1p(jnp.exp(jnp.minimum(x, 20.0))))


# ---------------------------- Pallas kernel ---------------------------------
def _make_dose1d_kernel(d_state):
    def kernel(xc_ref, win_ref, bin_ref, bw1_ref, bb1_ref, bw2_ref, bb2_ref,
               wf_ref, bf_ref, out_ref):
        xc = xc_ref[...]                                   # (D+C, TB), feature-major
        dc = xc.shape[0]
        sec = wf_ref.shape[0] // 3                         # K * _DPAD rows per section
        n_comp = sec // _DPAD

        # ---- ResidualMADE forward, feature-major (masks pre-folded into weights) ----
        h = jnp.dot(win_ref[...], xc, preferred_element_type=jnp.float32) + bin_ref[...]
        for i in range(bw1_ref.shape[0]):
            t = jnp.maximum(h, 0.0)
            t = jnp.dot(bw1_ref[i], t, preferred_element_type=jnp.float32) + bb1_ref[i]
            t = jnp.maximum(t, 0.0)
            t = jnp.dot(bw2_ref[i], t, preferred_element_type=jnp.float32) + bb2_ref[i]
            h = h + t
        h = jnp.maximum(h, 0.0)
        made = jnp.dot(wf_ref[...], h, preferred_element_type=jnp.float32) + bf_ref[...]
        # made: (3*sec, TB); sections [logits | locs | scales]; within a section the row
        # layout is comp*_DPAD + dim  (rows with dim >= d_state are zero padding).

        logits = made[0:sec]                               # (sec, TB)
        locs = made[sec:2 * sec]
        raws = made[2 * sec:3 * sec]
        scales = MIN_SCALE + _softplus(raws)
        log_scales = jnp.log(scales)

        # state replicated into the padded slab layout via a tiny 0/1 selection matmul
        r_idx = jax.lax.broadcasted_iota(jnp.int32, (sec, dc), 0)
        c_idx = jax.lax.broadcasted_iota(jnp.int32, (sec, dc), 1)
        rep = jnp.where((r_idx % _DPAD == c_idx) & (c_idx < d_state), 1.0, 0.0)
        x_exp = jnp.dot(rep, xc, preferred_element_type=jnp.float32)    # (sec, TB)

        z = (x_exp - locs) / scales
        comp_lp = -0.5 * z * z - log_scales - _HALF_LOG_2PI
        num = logits + comp_lp                             # logits + component log-prob

        def group_lse(a):      # (sec, TB) -> (_DPAD, TB); rows < d_state are valid
            slabs = [a[_DPAD * kk:_DPAD * (kk + 1)] for kk in range(n_comp)]
            m = slabs[0]
            for s in slabs[1:]:
                m = jnp.maximum(m, s)
            e = jnp.exp(slabs[0] - m)
            for s in slabs[1:]:
                e = e + jnp.exp(s - m)
            return m + jnp.log(e)

        # per-dim mixture log-prob = lse(logits + comp) - lse(logits)
        diff = group_lse(num) - group_lse(logits)          # (_DPAD, TB)

        # masked sum over the D valid dims, producing the lane-dense (1, TB) output row
        wrow = (jax.lax.broadcasted_iota(jnp.int32, (1, _DPAD), 1)
                < d_state).astype(jnp.float32)             # (1, _DPAD)
        out_ref[...] = jnp.dot(wrow, diff, preferred_element_type=jnp.float32)

    return kernel


# ---------------------------- host-side wrapper ------------------------------
def init_params(key, d, h, c, k, n_blocks):
    """Deterministic parameter init + MADE mask construction (folded into W)."""
    deg_in = np.arange(1, d + 1)                         # input degrees 1..D
    deg_h = (np.arange(h) % max(1, d - 1)) + 1           # hidden degrees
    deg_out = np.repeat(deg_in, 3 * k)                   # per-dim contiguous output cols
    mask_in = (deg_h[None, :] >= deg_in[:, None]).astype(np.float32)    # (D, H)
    mask_hid = (deg_h[None, :] >= deg_h[:, None]).astype(np.float32)    # (H, H)
    mask_out = (deg_out[None, :] > deg_h[:, None]).astype(np.float32)   # (H, D*3K)

    keys = iter(jax.random.split(key, 4 * (n_blocks + 3)))

    def lin(fan_in, fan_out):
        lim = 1.0 / np.sqrt(fan_in)
        w = jax.random.uniform(next(keys), (fan_in, fan_out), jnp.float32, -lim, lim)
        b = jax.random.uniform(next(keys), (1, fan_out), jnp.float32, -lim, lim)
        return w, b

    w0, b0 = lin(d, h)                 # masked initial layer
    wc, bc = lin(c, h)                 # unmasked conditioning layer
    bw1, bb1, bw2, bb2 = [], [], [], []
    for _ in range(n_blocks):
        w1, b1 = lin(h, h)
        w2, b2 = lin(h, h)
        bw1.append(w1 * mask_hid); bb1.append(b1)
        bw2.append(w2 * mask_hid); bb2.append(b2)
    wf, bf = lin(h, d * 3 * k)         # masked output layer

    return dict(
        w0=w0 * jnp.asarray(mask_in), b0=b0,
        wc=wc, bc=bc,
        bw1=jnp.stack(bw1), bb1=jnp.stack(bb1),   # (n_blocks, H, H), (n_blocks, 1, H)
        bw2=jnp.stack(bw2), bb2=jnp.stack(bb2),
        wf=wf * jnp.asarray(mask_out), bf=bf,
    )


def prepare_kernel_params(p):
    """Convert natural (PyTorch-layout) params into the kernel's feature-major layout."""
    d, h = p["w0"].shape
    c = p["wc"].shape[0]
    k = p["wf"].shape[1] // (3 * d)
    assert d <= _DPAD, "state_dim > 8 would need a larger slab padding"

    win_t = jnp.concatenate([p["w0"], p["wc"]], axis=0).T          # (H, D+C)  fused entry
    b_in = (p["b0"] + p["bc"]).T                                   # (H, 1)
    bw1_t = jnp.transpose(p["bw1"], (0, 2, 1))                     # (nb, H, H)
    bw2_t = jnp.transpose(p["bw2"], (0, 2, 1))
    bb1_t = jnp.transpose(p["bb1"], (0, 2, 1))                     # (nb, H, 1)
    bb2_t = jnp.transpose(p["bb2"], (0, 2, 1))

    # Re-order output columns: natural col d*3K + s*K + j  ->  row s*sec + j*_DPAD + d
    wf = np.asarray(p["wf"]); bf = np.asarray(p["bf"])
    sec = k * _DPAD
    wf_t = np.zeros((3 * sec, h), np.float32)
    bf_t = np.zeros((3 * sec, 1), np.float32)
    for s in range(3):
        for dd in range(d):
            for j in range(k):
                old = dd * 3 * k + s * k + j
                new = s * sec + j * _DPAD + dd
                wf_t[new, :] = wf[:, old]
                bf_t[new, 0] = bf[0, old]

    return dict(win_t=win_t, b_in=b_in, bw1_t=bw1_t, bb1_t=bb1_t,
                bw2_t=bw2_t, bb2_t=bb2_t,
                wf_t=jnp.asarray(wf_t), bf_t=jnp.asarray(bf_t))


def dose1d_forward(state, cond, kparams, tb=256):
    """state: (B, D), cond: (B, C) -> per-sample log-prob (B,)."""
    b, d = state.shape
    c = cond.shape[1]
    assert tb % 128 == 0
    b_pad = ((b + tb - 1) // tb) * tb
    num_tiles = b_pad // tb

    # feature-major input: rows 0..D-1 state dims, D..D+C-1 conditioning dims
    xc = jnp.concatenate([state, cond], axis=1).T.astype(jnp.float32)   # (D+C, B)
    if b_pad != b:
        xc = jnp.pad(xc, ((0, 0), (0, b_pad - b)))

    def full_spec(a):
        nd = a.ndim
        return pl.BlockSpec(a.shape, lambda i, nd=nd: (0,) * nd)

    in_specs = [pl.BlockSpec((d + c, tb), lambda i: (0, i))]
    in_specs += [full_spec(kparams[n]) for n in _PARAM_ORDER]

    # advisory cost estimate for the surrounding XLA scheduler
    h_dim = kparams["win_t"].shape[0]
    nb = kparams["bw1_t"].shape[0]
    rows_out = kparams["wf_t"].shape[0]
    mm = h_dim * (d + c) + nb * 2 * h_dim * h_dim + rows_out * h_dim + rows_out * (d + c)
    param_bytes = sum(int(np.prod(kparams[n].shape)) * 4 for n in _PARAM_ORDER)
    cost = pl.CostEstimate(
        flops=int(2 * b_pad * mm),
        transcendentals=int(3 * b_pad * rows_out),
        bytes_accessed=int(xc.size * 4 + b_pad * 4 + num_tiles * param_bytes),
    )

    out = pl.pallas_call(
        _make_dose1d_kernel(d),
        out_shape=jax.ShapeDtypeStruct((1, b_pad), jnp.float32),
        grid_spec=pltpu.PrefetchScalarGridSpec(
            num_scalar_prefetch=0,
            grid=(num_tiles,),
            in_specs=in_specs,
            out_specs=pl.BlockSpec((1, tb), lambda i: (0, i)),
        ),
        compiler_params=pltpu.CompilerParams(dimension_semantics=("parallel",)),
        cost_estimate=cost,
    )(xc, *[kparams[n] for n in _PARAM_ORDER])
    return out[0, :b]


# ---------------------------- pure-JAX reference -----------------------------
def reference_forward(state, cond, params):
    h = state @ params["w0"] + params["b0"]
    h = h + cond @ params["wc"] + params["bc"]
    for i in range(params["bw1"].shape[0]):
        t = jnp.maximum(h, 0.0)
        t = t @ params["bw1"][i] + params["bb1"][i]
        t = jnp.maximum(t, 0.0)
        t = t @ params["bw2"][i] + params["bb2"][i]
        h = h + t
    h = jnp.maximum(h, 0.0)
    out = h @ params["wf"] + params["bf"]
    b, d = state.shape
    k = params["wf"].shape[1] // (3 * d)
    out = out.reshape(b, d, 3 * k)
    logits = out[..., :k]
    locs = out[..., k:2 * k]
    scales = MIN_SCALE + _softplus(out[..., 2 * k:])
    log_mix = logits - jax.scipy.special.logsumexp(logits, axis=-1, keepdims=True)
    z = (state[..., None] - locs) / scales
    comp = -0.5 * z * z - jnp.log(scales) - _HALF_LOG_2PI
    return jax.scipy.special.logsumexp(log_mix + comp, axis=-1).sum(-1)


if __name__ == "__main__":
    key = jax.random.PRNGKey(0)
    kp_, ks, kc, ks2, kc2 = jax.random.split(key, 5)
    params = init_params(kp_, STATE_DIM, HIDDEN_DIM, COND_DIM, N_COMPONENTS, N_BLOCKS)
    kparams = prepare_kernel_params(params)

    # small primary example
    B = 8
    state = jax.random.normal(ks, (B, STATE_DIM), jnp.float32)
    cond = jax.random.normal(kc, (B, COND_DIM), jnp.float32)   # `mask` conditioning input
    logp = dose1d_forward(state, cond, kparams)
    jax.block_until_ready(logp)
    assert logp.shape == (B,)
    ref = reference_forward(state, cond, params)
    np.testing.assert_allclose(np.asarray(logp), np.asarray(ref), rtol=5e-4, atol=5e-4)

    # multi-tile path: exercises batch tiling, zero padding, grid > 1
    B2 = 300
    state2 = jax.random.normal(ks2, (B2, STATE_DIM), jnp.float32)
    cond2 = jax.random.normal(kc2, (B2, COND_DIM), jnp.float32)
    logp2 = dose1d_forward(state2, cond2, kparams)
    jax.block_until_ready(logp2)
    ref2 = reference_forward(state2, cond2, params)
    np.testing.assert_allclose(np.asarray(logp2), np.asarray(ref2), rtol=5e-4, atol=5e-4)

    print("KERNEL_OK")
</pallas_src>

<mosaic_0001>
module attributes {stable_mosaic.version = 11 : i64} {
  func.func @kernel(%arg0: i32, %arg1: memref<12x256xf32, #tpu.memory_space<vmem>>, %arg2: memref<32x12xf32, #tpu.memory_space<vmem>>, %arg3: memref<32x1xf32, #tpu.memory_space<vmem>>, %arg4: memref<2x32x32xf32, #tpu.memory_space<vmem>>, %arg5: memref<2x32x1xf32, #tpu.memory_space<vmem>>, %arg6: memref<2x32x32xf32, #tpu.memory_space<vmem>>, %arg7: memref<2x32x1xf32, #tpu.memory_space<vmem>>, %arg8: memref<96x32xf32, #tpu.memory_space<vmem>>, %arg9: memref<96x1xf32, #tpu.memory_space<vmem>>, %arg10: memref<1x256xf32, #tpu.memory_space<vmem>>) attributes {dimension_semantics = [#tpu.dimension_semantics<parallel>], iteration_bounds = array<i64: 1>, scalar_prefetch = 0 : i64, scratch_operands = 0 : i64, tpu.core_type = #tpu.core_type<tc>, window_params = [{transform_indices = @transform_0, window_bounds = array<i64: 12, 256>}, {pipeline_mode = #tpu.pipeline_mode<synchronous>, transform_indices = @transform_1, window_bounds = array<i64: 32, 12>}, {pipeline_mode = #tpu.pipeline_mode<synchronous>, transform_indices = @transform_2, window_bounds = array<i64: 32, 1>}, {pipeline_mode = #tpu.pipeline_mode<synchronous>, transform_indices = @transform_3, window_bounds = array<i64: 2, 32, 32>}, {pipeline_mode = #tpu.pipeline_mode<synchronous>, transform_indices = @transform_4, window_bounds = array<i64: 2, 32, 1>}, {pipeline_mode = #tpu.pipeline_mode<synchronous>, transform_indices = @transform_5, window_bounds = array<i64: 2, 32, 32>}, {pipeline_mode = #tpu.pipeline_mode<synchronous>, transform_indices = @transform_6, window_bounds = array<i64: 2, 32, 1>}, {pipeline_mode = #tpu.pipeline_mode<synchronous>, transform_indices = @transform_7, window_bounds = array<i64: 96, 32>}, {pipeline_mode = #tpu.pipeline_mode<synchronous>, transform_indices = @transform_8, window_bounds = array<i64: 96, 1>}, {transform_indices = @transform_9, window_bounds = array<i64: 1, 256>}]} {
    %c0 = arith.constant 0 : index
    %c0_0 = arith.constant 0 : index
    %0 = vector.load %arg1[%c0, %c0_0] : memref<12x256xf32, #tpu.memory_space<vmem>>, vector<12x256xf32>
    %c0_1 = arith.constant 0 : index
    %c0_2 = arith.constant 0 : index
    %1 = vector.load %arg2[%c0_1, %c0_2] : memref<32x12xf32, #tpu.memory_space<vmem>>, vector<32x12xf32>
    %cst = arith.constant dense<0.000000e+00> : vector<32x256xf32>
    %2 = tpu.matmul %1, %0, %cst {dimension_numbers = #tpu.dot_dimension_numbers<[1], [0], [0], [1], [0, 0, 1, 1], [], []>} : vector<32x12xf32>, vector<12x256xf32>, vector<32x256xf32> -> vector<32x256xf32>
    %c0_3 = arith.constant 0 : index
    %c0_4 = arith.constant 0 : index
    %3 = vector.load %arg3[%c0_3, %c0_4] : memref<32x1xf32, #tpu.memory_space<vmem>>, vector<32x1xf32>
    %4 = vector.broadcast %3 : vector<32x1xf32> to vector<32x256xf32>
    %5 = arith.addf %2, %4 : vector<32x256xf32>
    %cst_5 = arith.constant 0.000000e+00 : f32
    %6 = vector.broadcast %cst_5 : f32 to vector<32x256xf32>
    %7 = arith.maximumf %5, %6 : vector<32x256xf32>
    %c0_6 = arith.constant 0 : index
    %c0_7 = arith.constant 0 : index
    %c0_8 = arith.constant 0 : index
    %8 = vector.load %arg4[%c0_6, %c0_7, %c0_8] : memref<2x32x32xf32, #tpu.memory_space<vmem>>, vector<1x32x32xf32>
    %9 = vector.shape_cast %8 : vector<1x32x32xf32> to vector<32x32xf32>
    %cst_9 = arith.constant dense<0.000000e+00> : vector<32x256xf32>
    %10 = tpu.matmul %9, %7, %cst_9 {dimension_numbers = #tpu.dot_dimension_numbers<[1], [0], [0], [1], [0, 0, 1, 1], [], []>} : vector<32x32xf32>, vector<32x256xf32>, vector<32x256xf32> -> vector<32x256xf32>
    %c0_10 = arith.constant 0 : index
    %c0_11 = arith.constant 0 : index
    %c0_12 = arith.constant 0 : index
    %11 = vector.load %arg5[%c0_10, %c0_11, %c0_12] : memref<2x32x1xf32, #tpu.memory_space<vmem>>, vector<1x32x1xf32>
    %12 = vector.shape_cast %11 : vector<1x32x1xf32> to vector<32x1xf32>
    %13 = vector.broadcast %12 : vector<32x1xf32> to vector<32x256xf32>
    %14 = arith.addf %10, %13 : vector<32x256xf32>
    %cst_13 = arith.constant 0.000000e+00 : f32
    %15 = vector.broadcast %cst_13 : f32 to vector<32x256xf32>
    %16 = arith.maximumf %14, %15 : vector<32x256xf32>
    %c0_14 = arith.constant 0 : index
    %c0_15 = arith.constant 0 : index
    %c0_16 = arith.constant 0 : index
    %17 = vector.load %arg6[%c0_14, %c0_15, %c0_16] : memref<2x32x32xf32, #tpu.memory_space<vmem>>, vector<1x32x32xf32>
    %18 = vector.shape_cast %17 : vector<1x32x32xf32> to vector<32x32xf32>
    %cst_17 = arith.constant dense<0.000000e+00> : vector<32x256xf32>
    %19 = tpu.matmul %18, %16, %cst_17 {dimension_numbers = #tpu.dot_dimension_numbers<[1], [0], [0], [1], [0, 0, 1, 1], [], []>} : vector<32x32xf32>, vector<32x256xf32>, vector<32x256xf32> -> vector<32x256xf32>
    %c0_18 = arith.constant 0 : index
    %c0_19 = arith.constant 0 : index
    %c0_20 = arith.constant 0 : index
    %20 = vector.load %arg7[%c0_18, %c0_19, %c0_20] : memref<2x32x1xf32, #tpu.memory_space<vmem>>, vector<1x32x1xf32>
    %21 = vector.shape_cast %20 : vector<1x32x1xf32> to vector<32x1xf32>
    %22 = vector.broadcast %21 : vector<32x1xf32> to vector<32x256xf32>
    %23 = arith.addf %19, %22 : vector<32x256xf32>
    %24 = arith.addf %5, %23 : vector<32x256xf32>
    %cst_21 = arith.constant 0.000000e+00 : f32
    %25 = vector.broadcast %cst_21 : f32 to vector<32x256xf32>
    %26 = arith.maximumf %24, %25 : vector<32x256xf32>
    %c1 = arith.constant 1 : index
    %c0_22 = arith.constant 0 : index
    %c0_23 = arith.constant 0 : index
    %27 = vector.load %arg4[%c1, %c0_22, %c0_23] : memref<2x32x32xf32, #tpu.memory_space<vmem>>, vector<1x32x32xf32>
    %28 = vector.shape_cast %27 : vector<1x32x32xf32> to vector<32x32xf32>
    %cst_24 = arith.constant dense<0.000000e+00> : vector<32x256xf32>
    %29 = tpu.matmul %28, %26, %cst_24 {dimension_numbers = #tpu.dot_dimension_numbers<[1], [0], [0], [1], [0, 0, 1, 1], [], []>} : vector<32x32xf32>, vector<32x256xf32>, vector<32x256xf32> -> vector<32x256xf32>
    %c1_25 = arith.constant 1 : index
    %c0_26 = arith.constant 0 : index
    %c0_27 = arith.constant 0 : index
    %30 = vector.load %arg5[%c1_25, %c0_26, %c0_27] : memref<2x32x1xf32, #tpu.memory_space<vmem>>, vector<1x32x1xf32>
    %31 = vector.shape_cast %30 : vector<1x32x1xf32> to vector<32x1xf32>
    %32 = vector.broadcast %31 : vector<32x1xf32> to vector<32x256xf32>
    %33 = arith.addf %29, %32 : vector<32x256xf32>
    %cst_28 = arith.constant 0.000000e+00 : f32
    %34 = vector.broadcast %cst_28 : f32 to vector<32x256xf32>
    %35 = arith.maximumf %33, %34 : vector<32x256xf32>
    %c1_29 = arith.constant 1 : index
    %c0_30 = arith.constant 0 : index
    %c0_31 = arith.constant 0 : index
    %36 = vector.load %arg6[%c1_29, %c0_30, %c0_31] : memref<2x32x32xf32, #tpu.memory_space<vmem>>, vector<1x32x32xf32>
    %37 = vector.shape_cast %36 : vector<1x32x32xf32> to vector<32x32xf32>
    %cst_32 = arith.constant dense<0.000000e+00> : vector<32x256xf32>
    %38 = tpu.matmul %37, %35, %cst_32 {dimension_numbers = #tpu.dot_dimension_numbers<[1], [0], [0], [1], [0, 0, 1, 1], [], []>} : vector<32x32xf32>, vector<32x256xf32>, vector<32x256xf32> -> vector<32x256xf32>
    %c1_33 = arith.constant 1 : index
    %c0_34 = arith.constant 0 : index
    %c0_35 = arith.constant 0 : index
    %39 = vector.load %arg7[%c1_33, %c0_34, %c0_35] : memref<2x32x1xf32, #tpu.memory_space<vmem>>, vector<1x32x1xf32>
    %40 = vector.shape_cast %39 : vector<1x32x1xf32> to vector<32x1xf32>
    %41 = vector.broadcast %40 : vector<32x1xf32> to vector<32x256xf32>
    %42 = arith.addf %38, %41 : vector<32x256xf32>
    %43 = arith.addf %24, %42 : vector<32x256xf32>
    %cst_36 = arith.constant 0.000000e+00 : f32
    %44 = vector.broadcast %cst_36 : f32 to vector<32x256xf32>
    %45 = arith.maximumf %43, %44 : vector<32x256xf32>
    %c0_37 = arith.constant 0 : index
    %c0_38 = arith.constant 0 : index
    %46 = vector.load %arg8[%c0_37, %c0_38] : memref<96x32xf32, #tpu.memory_space<vmem>>, vector<96x32xf32>
    %cst_39 = arith.constant dense<0.000000e+00> : vector<96x256xf32>
    %47 = tpu.matmul %46, %45, %cst_39 {dimension_numbers = #tpu.dot_dimension_numbers<[1], [0], [0], [1], [0, 0, 1, 1], [], []>} : vector<96x32xf32>, vector<32x256xf32>, vector<96x256xf32> -> vector<96x256xf32>
    %c0_40 = arith.constant 0 : index
    %c0_41 = arith.constant 0 : index
    %48 = vector.load %arg9[%c0_40, %c0_41] : memref<96x1xf32, #tpu.memory_space<vmem>>, vector<96x1xf32>
    %49 = vector.broadcast %48 : vector<96x1xf32> to vector<96x256xf32>
    %50 = arith.addf %47, %49 : vector<96x256xf32>
    %51 = vector.extract_strided_slice %50 {offsets = [0, 0], sizes = [32, 256], strides = [1, 1]} : vector<96x256xf32> to vector<32x256xf32>
    %52 = vector.extract_strided_slice %50 {offsets = [32, 0], sizes = [32, 256], strides = [1, 1]} : vector<96x256xf32> to vector<32x256xf32>
    %53 = vector.extract_strided_slice %50 {offsets = [64, 0], sizes = [32, 256], strides = [1, 1]} : vector<96x256xf32> to vector<32x256xf32>
    %cst_42 = arith.constant 2.000000e+01 : f32
    %54 = vector.broadcast %cst_42 : f32 to vector<32x256xf32>
    %55 = arith.cmpf ogt, %53, %54 : vector<32x256xf32>
    %cst_43 = arith.constant 2.000000e+01 : f32
    %56 = vector.broadcast %cst_43 : f32 to vector<32x256xf32>
    %57 = arith.minimumf %53, %56 : vector<32x256xf32>
    %58 = math.exp %57 : vector<32x256xf32>
    %59 = math.log1p %58 : vector<32x256xf32>
    %60 = arith.select %55, %53, %59 : vector<32x256xi1>, vector<32x256xf32>
    %cst_44 = arith.constant 1.000000e-03 : f32
    %61 = vector.broadcast %cst_44 : f32 to vector<32x256xf32>
    %62 = arith.addf %61, %60 : vector<32x256xf32>
    %63 = math.log %62 : vector<32x256xf32>
    %64 = tpu.iota {dimensions = array<i32: 0>} : vector<32x12xi32>
    %65 = tpu.iota {dimensions = array<i32: 1>} : vector<32x12xi32>
    %c8_i32 = arith.constant 8 : i32
    %c0_i32 = arith.constant 0 : i32
    %66 = arith.cmpi eq, %c8_i32, %c0_i32 : i32
    %c1_i32 = arith.constant 1 : i32
    %67 = arith.select %66, %c1_i32, %c8_i32 : i32
    %68 = vector.broadcast %67 : i32 to vector<32x12xi32>
    %69 = arith.remsi %64, %68 : vector<32x12xi32>
    %c0_i32_45 = arith.constant 0 : i32
    %70 = vector.broadcast %c0_i32_45 : i32 to vector<32x12xi32>
    %71 = arith.cmpi ne, %69, %70 : vector<32x12xi32>
    %c0_i32_46 = arith.constant 0 : i32
    %72 = vector.broadcast %c0_i32_46 : i32 to vector<32x12xi32>
    %73 = arith.cmpi slt, %69, %72 : vector<32x12xi32>
    %c0_i32_47 = arith.constant 0 : i32
    %74 = arith.cmpi slt, %67, %c0_i32_47 : i32
    %75 = vector.broadcast %74 : i1 to vector<32x12xi1>
    %76 = vector.broadcast %75 : vector<32x12xi1> to vector<32x12xi1>
    %77 = arith.xori %73, %76 : vector<32x12xi1>
    %78 = arith.andi %77, %71 : vector<32x12xi1>
    %79 = vector.broadcast %67 : i32 to vector<32x12xi32>
    %80 = arith.addi %69, %79 : vector<32x12xi32>
    %81 = arith.select %78, %80, %69 : vector<32x12xi1>, vector<32x12xi32>
    %82 = arith.cmpi eq, %81, %65 : vector<32x12xi32>
    %c4_i32 = arith.constant 4 : i32
    %83 = vector.broadcast %c4_i32 : i32 to vector<32x12xi32>
    %84 = arith.cmpi slt, %65, %83 : vector<32x12xi32>
    %85 = arith.andi %82, %84 : vector<32x12xi1>
    %cst_48 = arith.constant 1.000000e+00 : f32
    %cst_49 = arith.constant 0.000000e+00 : f32
    %86 = vector.broadcast %cst_48 : f32 to vector<32x12xf32>
    %87 = vector.broadcast %cst_49 : f32 to vector<32x12xf32>
    %88 = arith.select %85, %86, %87 : vector<32x12xi1>, vector<32x12xf32>
    %cst_50 = arith.constant dense<0.000000e+00> : vector<32x256xf32>
    %89 = tpu.matmul %88, %0, %cst_50 {dimension_numbers = #tpu.dot_dimension_numbers<[1], [0], [0], [1], [0, 0, 1, 1], [], []>} : vector<32x12xf32>, vector<12x256xf32>, vector<32x256xf32> -> vector<32x256xf32>
    %90 = arith.subf %89, %52 : vector<32x256xf32>
    %91 = arith.divf %90, %62 : vector<32x256xf32>
    %cst_51 = arith.constant -5.000000e-01 : f32
    %92 = vector.broadcast %cst_51 : f32 to vector<32x256xf32>
    %93 = arith.mulf %92, %91 : vector<32x256xf32>
    %94 = arith.mulf %93, %91 : vector<32x256xf32>
    %95 = arith.subf %94, %63 : vector<32x256xf32>
    %cst_52 = arith.constant 0.918938517 : f32
    %96 = vector.broadcast %cst_52 : f32 to vector<32x256xf32>
    %97 = arith.subf %95, %96 : vector<32x256xf32>
    %98 = arith.addf %51, %97 : vector<32x256xf32>
    %99 = vector.extract_strided_slice %98 {offsets = [0, 0], sizes = [8, 256], strides = [1, 1]} : vector<32x256xf32> to vector<8x256xf32>
    %100 = vector.extract_strided_slice %98 {offsets = [8, 0], sizes = [8, 256], strides = [1, 1]} : vector<32x256xf32> to vector<8x256xf32>
    %101 = vector.extract_strided_slice %98 {offsets = [16, 0], sizes = [8, 256], strides = [1, 1]} : vector<32x256xf32> to vector<8x256xf32>
    %102 = vector.extract_strided_slice %98 {offsets = [24, 0], sizes = [8, 256], strides = [1, 1]} : vector<32x256xf32> to vector<8x256xf32>
    %103 = arith.maximumf %99, %100 : vector<8x256xf32>
    %104 = arith.maximumf %103, %101 : vector<8x256xf32>
    %105 = arith.maximumf %104, %102 : vector<8x256xf32>
    %106 = arith.subf %99, %105 : vector<8x256xf32>
    %107 = math.exp %106 : vector<8x256xf32>
    %108 = arith.subf %100, %105 : vector<8x256xf32>
    %109 = math.exp %108 : vector<8x256xf32>
    %110 = arith.addf %107, %109 : vector<8x256xf32>
    %111 = arith.subf %101, %105 : vector<8x256xf32>
    %112 = math.exp %111 : vector<8x256xf32>
    %113 = arith.addf %110, %112 : vector<8x256xf32>
    %114 = arith.subf %102, %105 : vector<8x256xf32>
    %115 = math.exp %114 : vector<8x256xf32>
    %116 = arith.addf %113, %115 : vector<8x256xf32>
    %117 = math.log %116 : vector<8x256xf32>
    %118 = arith.addf %105, %117 : vector<8x256xf32>
    %119 = vector.extract_strided_slice %51 {offsets = [0, 0], sizes = [8, 256], strides = [1, 1]} : vector<32x256xf32> to vector<8x256xf32>
    %120 = vector.extract_strided_slice %51 {offsets = [8, 0], sizes = [8, 256], strides = [1, 1]} : vector<32x256xf32> to vector<8x256xf32>
    %121 = vector.extract_strided_slice %51 {offsets = [16, 0], sizes = [8, 256], strides = [1, 1]} : vector<32x256xf32> to vector<8x256xf32>
    %122 = vector.extract_strided_slice %51 {offsets = [24, 0], sizes = [8, 256], strides = [1, 1]} : vector<32x256xf32> to vector<8x256xf32>
    %123 = arith.maximumf %119, %120 : vector<8x256xf32>
    %124 = arith.maximumf %123, %121 : vector<8x256xf32>
    %125 = arith.maximumf %124, %122 : vector<8x256xf32>
    %126 = arith.subf %119, %125 : vector<8x256xf32>
    %127 = math.exp %126 : vector<8x256xf32>
    %128 = arith.subf %120, %125 : vector<8x256xf32>
    %129 = math.exp %128 : vector<8x256xf32>
    %130 = arith.addf %127, %129 : vector<8x256xf32>
    %131 = arith.subf %121, %125 : vector<8x256xf32>
    %132 = math.exp %131 : vector<8x256xf32>
    %133 = arith.addf %130, %132 : vector<8x256xf32>
    %134 = arith.subf %122, %125 : vector<8x256xf32>
    %135 = math.exp %134 : vector<8x256xf32>
    %136 = arith.addf %133, %135 : vector<8x256xf32>
    %137 = math.log %136 : vector<8x256xf32>
    %138 = arith.addf %125, %137 : vector<8x256xf32>
    %139 = arith.subf %118, %138 : vector<8x256xf32>
    %140 = tpu.iota {dimensions = array<i32: 1>} : vector<1x8xi32>
    %c4_i32_53 = arith.constant 4 : i32
    %141 = vector.broadcast %c4_i32_53 : i32 to vector<1x8xi32>
    %142 = arith.cmpi slt, %140, %141 : vector<1x8xi32>
    %143 = arith.extui %142 : vector<1x8xi1> to vector<1x8xi32>
    %144 = arith.sitofp %143 : vector<1x8xi32> to vector<1x8xf32>
    %cst_54 = arith.constant dense<0.000000e+00> : vector<1x256xf32>
    %145 = tpu.matmul %144, %139, %cst_54 {dimension_numbers = #tpu.dot_dimension_numbers<[1], [0], [0], [1], [0, 0, 1, 1], [], []>} : vector<1x8xf32>, vector<8x256xf32>, vector<1x256xf32> -> vector<1x256xf32>
    %c0_55 = arith.constant 0 : index
    %c0_56 = arith.constant 0 : index
    %146 = vector.load %arg10[%c0_55, %c0_56] : memref<1x256xf32, #tpu.memory_space<vmem>>, vector<1x256xf32>
    tpu.vector_store %arg10[%c0_55, %c0_56], %145 {strides = array<i32>} : memref<1x256xf32, #tpu.memory_space<vmem>>, vector<1x256xf32>,
    return
  }
  func.func @transform_0(%arg0: i32) -> (i32, i32) {
    %c0_i32 = arith.constant 0 : i32
    %c0_i32_0 = arith.constant 0 : i32
    return %c0_i32, %arg0 : i32, i32
  }
  func.func @transform_1(%arg0: i32) -> (i32, i32) {
    %c0_i32 = arith.constant 0 : i32
    %c0_i32_0 = arith.constant 0 : i32
    %c0_i32_1 = arith.constant 0 : i32
    return %c0_i32, %c0_i32_0 : i32, i32
  }
  func.func @transform_2(%arg0: i32) -> (i32, i32) {
    %c0_i32 = arith.constant 0 : i32
    %c0_i32_0 = arith.constant 0 : i32
    %c0_i32_1 = arith.constant 0 : i32
    return %c0_i32, %c0_i32_0 : i32, i32
  }
  func.func @transform_3(%arg0: i32) -> (i32, i32, i32) {
    %c0_i32 = arith.constant 0 : i32
    %c0_i32_0 = arith.constant 0 : i32
    %c0_i32_1 = arith.constant 0 : i32
    %c0_i32_2 = arith.constant 0 : i32
    return %c0_i32, %c0_i32_0, %c0_i32_1 : i32, i32, i32
  }
  func.func @transform_4(%arg0: i32) -> (i32, i32, i32) {
    %c0_i32 = arith.constant 0 : i32
    %c0_i32_0 = arith.constant 0 : i32
    %c0_i32_1 = arith.constant 0 : i32
    %c0_i32_2 = arith.constant 0 : i32
    return %c0_i32, %c0_i32_0, %c0_i32_1 : i32, i32, i32
  }
  func.func @transform_5(%arg0: i32) -> (i32, i32, i32) {
    %c0_i32 = arith.constant 0 : i32
    %c0_i32_0 = arith.constant 0 : i32
    %c0_i32_1 = arith.constant 0 : i32
    %c0_i32_2 = arith.constant 0 : i32
    return %c0_i32, %c0_i32_0, %c0_i32_1 : i32, i32, i32
  }
  func.func @transform_6(%arg0: i32) -> (i32, i32, i32) {
    %c0_i32 = arith.constant 0 : i32
    %c0_i32_0 = arith.constant 0 : i32
    %c0_i32_1 = arith.constant 0 : i32
    %c0_i32_2 = arith.constant 0 : i32
    return %c0_i32, %c0_i32_0, %c0_i32_1 : i32, i32, i32
  }
  func.func @transform_7(%arg0: i32) -> (i32, i32) {
    %c0_i32 = arith.constant 0 : i32
    %c0_i32_0 = arith.constant 0 : i32
    %c0_i32_1 = arith.constant 0 : i32
    return %c0_i32, %c0_i32_0 : i32, i32
  }
  func.func @transform_8(%arg0: i32) -> (i32, i32) {
    %c0_i32 = arith.constant 0 : i32
    %c0_i32_0 = arith.constant 0 : i32
    %c0_i32_1 = arith.constant 0 : i32
    return %c0_i32, %c0_i32_0 : i32, i32
  }
  func.func @transform_9(%arg0: i32) -> (i32, i32) {
    %c0_i32 = arith.constant 0 : i32
    %c0_i32_0 = arith.constant 0 : i32
    return %c0_i32, %arg0 : i32, i32
  }
}

</mosaic_0001>

<bundles_post_ra>
// kernel: tpu_custom_call.1
= control target key start
LH: loop header
LB: loop body
LE: loop exit
PB: predicated region body
PF: predicated region fallthrough
CT: control target
= control target key end

     0   :  { %vm78_vm0 = vcmask 1043456   ;;  %vm1834_vm1 = vmmov 1   ;;  %v2571_v7 = vmov 0.0   ;;  %v1836_v8 = vmov 0   ;;  %s2560_s0 = inlined_call_operand.vmem [shape: f32[12,256], index: 0, kind: input, shape index: {}]   ;;  %s2561_s1 = inlined_call_operand.vmem [shape: f32[32,12], index: 1, kind: input, shape index: {}]   ;;  %s2562_s2 = inlined_call_operand.vmem [shape: f32[32,1], index: 2, kind: input, shape index: {}]   ;;  %s2563_s3 = inlined_call_operand.vmem [shape: f32[2,32,32], index: 3, kind: input, shape index: {}]   ;;  %s2564_s4 = inlined_call_operand.vmem [shape: f32[2,32,1], index: 4, kind: input, shape index: {}]   ;;  %s2565_s5 = inlined_call_operand.vmem [shape: f32[2,32,32], index: 5, kind: input, shape index: {}]   ;;  %s2566_s6 = inlined_call_operand.vmem [shape: f32[2,32,1], index: 6, kind: input, shape index: {}]   ;;  %s2567_s7 = inlined_call_operand.vmem [shape: f32[96,32], index: 7, kind: input, shape index: {}]   ;;  %s2568_s8 = inlined_call_operand.vmem [shape: f32[96,1], index: 8, kind: input, shape index: {}]   ;;  %s2569_s9 = inlined_call_operand.hbm [shape: f32[1,256], index: 9, kind: output, shape index: {}]  }
   0x1   :  { %v34_v0 = vld [vmem:[%s2560_s0 + $0x8] sm:$0xff]  ;;  %v36_v1 = vld [vmem:[%s2560_s0 + $0x18] sm:$0xf]  ;;  %v33_v2 = vld [vmem:[%s2560_s0] sm:$0xff]  ;;  %149 = vmatprep.mubr.f32.mxu0 %v2571_v7  ;;  %1704 = vset.pattern.permute.xlu0 %v1836_v8  ;;  %vm65_vm3 = vcmask 97280  }
   0x2   :  { %v1898_v3 = vpack.c.bf16 %v36_v1, %v34_v0  ;;  %vm1900_vm2 = vmpackc.low %vm78_vm0, %vm1834_vm1  ;;  %v35_v5 = vld [vmem:[%s2560_s0 + $0x10] sm:$0xf]  ;;  %v41_v9 = vld [vmem:[%s2562_s2] sm:$0xff]  ;;  %1705 = vset.pattern.permute.xlu1 %v1836_v8  ;;  %299 = vmatprep.mubr.f32.mxu1 %v2571_v7 }
   0x3   :  { %v1907_v6 = vpack.c.bf16 %v35_v5, %v33_v2  ;;  %v43_v10 = vld [vmem:[%s2562_s2 + $0x10] sm:$0xff]  ;;  %v37_v11 = vld [vmem:[%s2561_s1] sm:$0xff]  ;;  %47 = vperm.xlu0 %1704, %v41_v9   ;;  %v42_v12 = vld [vmem:[%s2562_s2 + $0x8] sm:$0xff] }
   0x4   :  { %1645 = vmatprep.subr.msk.bf16.mxu0 %vm1900_vm2, %v1898_v3  ;;  %57 = vperm.xlu1 %1705, %v43_v10   ;;  %v44_v13 = vld [vmem:[%s2562_s2 + $0x18] sm:$0xff]  ;;  %v38_v14 = vld [vmem:[%s2561_s1 + $0x8] sm:$0xff]  ;;  %v186_v15 = vld [vmem:[%s2564_s4] sm:$0xff] }
   0x5   :  { %1648 = vmatpush1.bf16.msk.msra.mxu0 %vm1900_vm2, %v1907_v6  ;;  %v187_v16 = vld [vmem:[%s2564_s4 + $0x8] sm:$0xff]  ;;  %v39_v17 = vld [vmem:[%s2561_s1 + $0x10] sm:$0xff] }
   0x6   :  { %v188_v18 = vld [vmem:[%s2564_s4 + $0x10] sm:$0xff] }
   0x7   :  { %52 = vperm.xlu0 %1704, %v42_v12  }
   0x8   :  { %1579 = vmatmul.mubr.msk.f32.vlgmr.msra.gmra.mrb[0].mxu0 %vm65_vm3, %v37_v11  ;;  %62 = vperm.xlu1 %1705, %v44_v13  }
   0x9   :  { %155 = vmatprep.mubr.f32.mxu0 %v2571_v7 }
   0xb   :  { %192 = vperm.xlu0 %1704, %v186_v15  }
   0xc   :  { %1580 = vmatmul.mubr.msk.f32.gmra.mrb[2].mxu0 %vm65_vm3, %v38_v14  ;;  %197 = vperm.xlu1 %1705, %v187_v16  }
   0xd   :  { %161 = vmatprep.mubr.f32.mxu0 %v2571_v7 }
   0xe   :  { %14 = vsyncpa [#allocation3], 0  ;;  %v189_v19 = vld [vmem:[%s2564_s4 + $0x18] sm:$0xff]  ;;  %v324_v21 = vld [vmem:[%s2566_s6] sm:$0xff]  ;;  %vm210_vm4 = vcmask 261120   ;;  %v2570_v4 = vlaneseq }
   0xf   :  { %v40_v20 = vld [vmem:[%s2561_s1 + $0x18] sm:$0xff]  ;;  %202 = vperm.xlu0 %1704, %v188_v18   ;;  %v325_v22 = vld [vmem:[%s2566_s6 + $0x8] sm:$0xff]  ;;  %v326_v23 = vld [vmem:[%s2566_s6 + $0x10] sm:$0xff] }
  0x10   :  { %1581 = vmatmul.mubr.msk.f32.gmra.mrb[4].mxu0 %vm65_vm3, %v39_v17  ;;  %207 = vperm.xlu1 %1705, %v189_v19   ;;  %v327_v24 = vld [vmem:[%s2566_s6 + $0x18] sm:$0xff]  ;;  %v1595_v25 = vld [vmem:[%s2564_s4 + $0x20] sm:$0xff]  ;;  %v1596_v26 = vld [vmem:[%s2564_s4 + $0x28] sm:$0xff] }
  0x11   :  { %167 = vmatprep.mubr.f32.mxu0 %v2571_v7  ;;  %v1597_v27 = vld [vmem:[%s2564_s4 + $0x30] sm:$0xff]  ;;  %v1598_v28 = vld [vmem:[%s2564_s4 + $0x38] sm:$0xff]  ;;  %v1607_v29 = vld [vmem:[%s2566_s6 + $0x20] sm:$0xff] }
  0x12   :  { %v1608_v30 = vld [vmem:[%s2566_s6 + $0x28] sm:$0xff]  ;;  %v1609_v31 = vld [vmem:[%s2566_s6 + $0x30] sm:$0xff]  ;;  %v1610_v32 = vld [vmem:[%s2566_s6 + $0x38] sm:$0xff] }
  0x13   :  { %330 = vperm.xlu0 %1704, %v324_v21   ;;  %v771_v33 = vld [vmem:[%s2568_s8 + $0x40] sm:$0xff]  ;;  %v772_v34 = vld [vmem:[%s2568_s8 + $0x48] sm:$0xff]  ;;  %v773_v35 = vld [vmem:[%s2568_s8 + $0x50] sm:$0xff] }
  0x14   :  { %1582 = vmatmul.mubr.msk.f32.gmra.mrb[6].mxu0 %vm65_vm3, %v40_v20  ;;  %335 = vperm.xlu1 %1705, %v325_v22   ;;  %v774_v36 = vld [vmem:[%s2568_s8 + $0x58] sm:$0xff]  ;;  %v767_v37 = vld [vmem:[%s2568_s8 + $0x20] sm:$0xff]  ;;  %v768_v38 = vld [vmem:[%s2568_s8 + $0x28] sm:$0xff] }
  0x15   :  { %287 = vmatprep.mubr.f32.mxu0 %v2571_v7  ;;  %v769_v39 = vld [vmem:[%s2568_s8 + $0x30] sm:$0xff]  ;;  %v770_v40 = vld [vmem:[%s2568_s8 + $0x38] sm:$0xff]  ;;  %v763_v41 = vld [vmem:[%s2568_s8] sm:$0xff] }
  0x16   :  { %v764_v42 = vld [vmem:[%s2568_s8 + $0x8] sm:$0xff]  ;;  %v765_v43 = vld [vmem:[%s2568_s8 + $0x10] sm:$0xff]  ;;  %v766_v44 = vld [vmem:[%s2568_s8 + $0x18] sm:$0xff] }
  0x17   :  { %340 = vperm.xlu0 %1704, %v326_v23   ;;  %v182_v17 = vld [vmem:[%s2563_s3] sm:$0xff]  ;;  %v184_v18 = vld [vmem:[%s2563_s3 + $0x10] sm:$0xff]  ;;  %v183_v19 = vld [vmem:[%s2563_s3 + $0x8] sm:$0xff] }
  0x18   :  { %345 = vperm.xlu1 %1705, %v327_v24   ;;  %v185_v20 = vld [vmem:[%s2563_s3 + $0x18] sm:$0xff] }
  0x1b   :  { %477 = vperm.xlu0 %1704, %v1595_v25  }
  0x1c   :  { %482 = vperm.xlu1 %1705, %v1596_v26  }
  0x1f   :  { %487 = vperm.xlu0 %1704, %v1597_v27  }
  0x20   :  { %492 = vperm.xlu1 %1705, %v1598_v28  }
  0x23   :  { %616 = vperm.xlu0 %1704, %v1607_v29  }
  0x24   :  { %621 = vperm.xlu1 %1705, %v1608_v30  }
  0x27   :  { %626 = vperm.xlu0 %1704, %v1609_v31  }
  0x28   :  { %631 = vperm.xlu1 %1705, %v1610_v32  }
  0x2b   :  { %817 = vperm.xlu0 %1704, %v771_v33  }
  0x2c   :  { %822 = vperm.xlu1 %1705, %v772_v34  }
  0x2f   :  { %827 = vperm.xlu0 %1704, %v773_v35  }
  0x30   :  { %832 = vperm.xlu1 %1705, %v774_v36  }
  0x33   :  { %797 = vperm.xlu0 %1704, %v767_v37  }
  0x34   :  { %802 = vperm.xlu1 %1705, %v768_v38  }
  0x37   :  { %807 = vperm.xlu0 %1704, %v769_v39  }
  0x38   :  { %812 = vperm.xlu1 %1705, %v770_v40  }
  0x3b   :  { %777 = vperm.xlu0 %1704, %v763_v41  }
  0x3c   :  { %782 = vperm.xlu1 %1705, %v764_v42  }
  0x3f   :  { %787 = vperm.xlu0 %1704, %v765_v43  }
  0x40   :  { %792 = vperm.xlu1 %1705, %v766_v44  }
  0x82   :  { %v48_v45 = vpop.permute.xlu0 %47 }
  0x83   :  { %v58_v54 = vpop.permute.xlu1 %57 }
  0x86   :  { %v53_v48 = vpop.permute.xlu0 %52 }
  0x87   :  { %v63_v0 = vpop.permute.xlu1 %62 }
  0x8a   :  { %v193_v21 = vpop.permute.xlu0 %192 }
  0x8b   :  { %v198_v22 = vpop.permute.xlu1 %197 }
  0x8e   :  { %v203_v27 = vpop.permute.xlu0 %202 }
  0x8f   :  { %v208_v28 = vpop.permute.xlu1 %207 }
  0xdb   :  { %v151_v46 = vpop.f32.mrb[0].mxu0 }
  0xdc   :  { %v153_v47 = vpop.f32.mrb[1].mxu0  ;;  %v2035_v51 = vadd.f32 %v151_v46, %v48_v45 }
  0xdd   :  { %v2033_v49 = vadd.f32 %v153_v47, %v48_v45 }
  0xde   :  { %v174_v60 = vmax.f32 %v2035_v51, 0.0 }
  0xdf   :  { %v157_v50 = vpop.f32.mrb[2].mxu0  ;;  %v175_v57 = vmax.f32 %v2033_v49, 0.0 }
  0xe0   :  { %v2037_v52 = vadd.f32 %v157_v50, %v53_v48  ;;  %v159_v53 = vpop.f32.mrb[3].mxu0 }
  0xe1   :  { %v2039_v55 = vadd.f32 %v159_v53, %v53_v48 }
  0xe2   :  { %v176_v56 = vmax.f32 %v2037_v52, 0.0 }
  0xe3   :  { %v177_v58 = vmax.f32 %v2039_v55, 0.0  ;;  %v163_v59 = vpop.f32.mrb[4].mxu0 }
  0xe4   :  { %v165_v61 = vpop.f32.mrb[5].mxu0  ;;  %v1651_v63 = vpack.c.bf16 %v176_v56, %v174_v60  ;;  %v2047_v5 = vadd.f32 %v163_v59, %v58_v54  ;;  %v322_v59 = vld [vmem:[%s2565_s5 + $0x10] sm:$0xff]  ;;  %v323_v60 = vld [vmem:[%s2565_s5 + $0x18] sm:$0xff] }
  0xe5   :  { %v1649_v62 = vpack.c.bf16 %v177_v58, %v175_v57  ;;  %v2045_v1 = vadd.f32 %v165_v61, %v58_v54  ;;  %v320_v57 = vld [vmem:[%s2565_s5] sm:$0xff]  ;;  %v321_v58 = vld [vmem:[%s2565_s5 + $0x8] sm:$0xff] }
  0xe6   :  { %v178_v14 = vmax.f32 %v2047_v5, 0.0 }
  0xe7   :  { %v169_v2 = vpop.f32.mrb[6].mxu0  ;;  %1650 = vmatprep.subr.bf16.mxu0 %v1649_v62  ;;  %1695 = vmatprep.subr.bf16.mxu1 %v1649_v62  ;;  %v179_v12 = vmax.f32 %v2045_v1, 0.0  ;;  %v331_v62 = vpop.permute.xlu0 %330 }
  0xe8   :  { %v2049_v8 = vadd.f32 %v169_v2, %v63_v0  ;;  %v171_v9 = vpop.f32.mrb[7].mxu0  ;;  %1652 = vmatpush1.bf16.msra.mxu0 %v1651_v63  ;;  %1697 = vmatpush1.bf16.msra.mxu1 %v1651_v63 }
  0xe9   :  { %v2051_v10 = vadd.f32 %v171_v9, %v63_v0  ;;  %v336_v9 = vpop.permute.xlu1 %335 }
  0xea   :  { %v180_v11 = vmax.f32 %v2049_v8, 0.0 }
  0xeb   :  { %v181_v13 = vmax.f32 %v2051_v10, 0.0 }
  0xec   :  { %v1655_v16 = vpack.c.bf16 %v180_v11, %v178_v14 }
  0xed   :  { %v1653_v15 = vpack.c.bf16 %v181_v13, %v179_v12 }
  0xef   :  { %1654 = vmatprep.subr.bf16.mxu0 %v1653_v15  ;;  %1696 = vmatprep.subr.bf16.mxu1 %v1653_v15 }
  0xf0   :  { %1656 = vmatpush1.bf16.msra.mxu0 %v1655_v16  ;;  %1698 = vmatpush1.bf16.msra.mxu1 %v1655_v16 }
  0xf3   :  { %1583 = vmatmul.mubr.msk.f32.vlgmr.msra.gmra.mrb[8].mxu0 %vm210_vm4, %v182_v17  ;;  %1585 = vmatmul.mubr.msk.f32.vlgmr.msra.gmra.mrb[0].mxu1 %vm210_vm4, %v184_v18 }
  0xf4   :  { %293 = vmatprep.mubr.f32.mxu0 %v2571_v7  ;;  %305 = vmatprep.mubr.f32.mxu1 %v2571_v7 }
  0xf7   :  { %1584 = vmatmul.mubr.msk.f32.gmra.mrb[10].mxu0 %vm210_vm4, %v183_v19  ;;  %1586 = vmatmul.mubr.msk.f32.gmra.mrb[2].mxu1 %vm210_vm4, %v185_v20  ;;  %v341_v20 = vpop.permute.xlu0 %340 }
  0xf8   :  { %424 = vmatprep.mubr.f32.mxu0 %v2571_v7  ;;  %571 = vmatprep.mubr.f32.mxu1 %v2571_v7 }
 0x1c6   :  { %v289_v23 = vpop.f32.mrb[8].mxu0  ;;  %v301_v24 = vpop.f32.mrb[0].mxu1 }
 0x1c7   :  { %v291_v25 = vpop.f32.mrb[9].mxu0  ;;  %v303_v26 = vpop.f32.mrb[1].mxu1  ;;  %v290_v29 = vadd.f32 %v289_v23, %v193_v21  ;;  %v302_v30 = vadd.f32 %v301_v24, %v203_v27 }
 0x1c8   :  { %v292_v31 = vadd.f32 %v291_v25, %v193_v21  ;;  %v304_v32 = vadd.f32 %v303_v26, %v203_v27  ;;  %v346_v26 = vpop.permute.xlu1 %345 }
 0x1c9   :  { %v312_v41 = vmax.f32 %v290_v29, 0.0  ;;  %v316_v42 = vmax.f32 %v302_v30, 0.0 }
 0x1ca   :  { %v295_v33 = vpop.f32.mrb[10].mxu0  ;;  %v307_v34 = vpop.f32.mrb[2].mxu1  ;;  %v313_v45 = vmax.f32 %v292_v31, 0.0  ;;  %v317_v46 = vmax.f32 %v304_v32, 0.0 }
 0x1cb   :  { %v296_v35 = vadd.f32 %v295_v33, %v198_v22  ;;  %v308_v36 = vadd.f32 %v307_v34, %v208_v28  ;;  %v297_v37 = vpop.f32.mrb[11].mxu0  ;;  %v309_v38 = vpop.f32.mrb[3].mxu1 }
 0x1cc   :  { %v298_v39 = vadd.f32 %v297_v37, %v198_v22  ;;  %v310_v40 = vadd.f32 %v309_v38, %v208_v28 }
 0x1cd   :  { %v314_v43 = vmax.f32 %v296_v35, 0.0  ;;  %v318_v44 = vmax.f32 %v308_v36, 0.0 }
 0x1ce   :  { %v315_v47 = vmax.f32 %v298_v39, 0.0  ;;  %v319_v48 = vmax.f32 %v310_v40, 0.0  ;;  %v1594_v40 = vld [vmem:[%s2563_s3 + $0x38] sm:$0xff] }
 0x1cf   :  { %v1659_v50 = vpack.c.bf16 %v314_v43, %v312_v41  ;;  %v1663_v53 = vpack.c.bf16 %v318_v44, %v316_v42  ;;  %v478_v43 = vpop.permute.xlu0 %477 }
 0x1d0   :  { %v1657_v54 = vpack.c.bf16 %v315_v47, %v313_v45  ;;  %v1661_v56 = vpack.c.bf16 %v319_v48, %v317_v46  ;;  %v483_v45 = vpop.permute.xlu1 %482 }
 0x1d2   :  { %1658 = vmatprep.subr.bf16.mxu0 %v1657_v54 }
 0x1d3   :  { %1660 = vmatpush1.bf16.msra.mxu0 %v1659_v50 }
 0x1d4   :  { %1662 = vmatprep.subr.bf16.mxu0 %v1661_v56 }
 0x1d7   :  { %1664 = vmatpush1.bf16.msra.mxu0 %v1663_v53 }
 0x1da   :  { %1587 = vmatmul.mubr.msk.f32.vlgmr.msra.gmra.mrb[12].mxu0 %vm210_vm4, %v320_v57 }
 0x1db   :  { %430 = vmatprep.mubr.f32.mxu0 %v2571_v7 }
 0x1de   :  { %1588 = vmatmul.mubr.msk.f32.gmra.mrb[14].mxu0 %vm210_vm4, %v321_v58 }
 0x1df   :  { %436 = vmatprep.mubr.f32.mxu0 %v2571_v7 }
 0x1e2   :  { %1589 = vmatmul.mubr.msk.f32.gmra.mrb[16].mxu0 %vm210_vm4, %v322_v59 }
 0x1e3   :  { %442 = vmatprep.mubr.f32.mxu0 %v2571_v7 }
 0x1e6   :  { %1590 = vmatmul.mubr.msk.f32.gmra.mrb[18].mxu0 %vm210_vm4, %v323_v60 }
 0x1e7   :  { %710 = vmatprep.mubr.f32.mxu0 %v2571_v7 }
 0x2ad   :  { %v426_v61 = vpop.f32.mrb[12].mxu0 }
 0x2ae   :  { %v428_v63 = vpop.f32.mrb[13].mxu0  ;;  %v427_v2 = vadd.f32 %v426_v61, %v331_v62 }
 0x2af   :  { %v429_v0 = vadd.f32 %v428_v63, %v331_v62  ;;  %v488_v62 = vpop.permute.xlu0 %487 }
 0x2b0   :  { %v2101_v16 = vadd.f32 %v427_v2, %v2035_v51  ;;  %v493_v2 = vpop.permute.xlu1 %492 }
 0x2b1   :  { %v432_v11 = vpop.f32.mrb[14].mxu0  ;;  %v2098_v14 = vadd.f32 %v429_v0, %v2033_v49 }
 0x2b2   :  { %v433_v12 = vadd.f32 %v432_v11, %v336_v9  ;;  %v434_v13 = vpop.f32.mrb[15].mxu0  ;;  %v457_v25 = vmax.f32 %v2101_v16, 0.0 }
 0x2b3   :  { %v435_v15 = vadd.f32 %v434_v13, %v336_v9  ;;  %v458_v23 = vmax.f32 %v2098_v14, 0.0 }
 0x2b4   :  { %v2104_v17 = vadd.f32 %v433_v12, %v2037_v52 }
 0x2b5   :  { %v2107_v18 = vadd.f32 %v435_v15, %v2039_v55  ;;  %v438_v19 = vpop.f32.mrb[16].mxu0 }
 0x2b6   :  { %v459_v21 = vmax.f32 %v2104_v17, 0.0  ;;  %v440_v22 = vpop.f32.mrb[17].mxu0  ;;  %v439_v51 = vadd.f32 %v438_v19, %v341_v20 }
 0x2b7   :  { %v460_v49 = vmax.f32 %v2107_v18, 0.0  ;;  %v441_v24 = vadd.f32 %v440_v22, %v341_v20 }
 0x2b8   :  { %v1667_v28 = vpack.c.bf16 %v459_v21, %v457_v25  ;;  %v2117_v32 = vadd.f32 %v439_v51, %v2047_v5  ;;  %v1591_v5 = vld [vmem:[%s2563_s3 + $0x20] sm:$0xff]  ;;  %v1604_v25 = vld [vmem:[%s2565_s5 + $0x28] sm:$0xff]  ;;  %v1606_v51 = vld [vmem:[%s2565_s5 + $0x38] sm:$0xff] }
 0x2b9   :  { %v444_v27 = vpop.f32.mrb[18].mxu0  ;;  %v1665_v52 = vpack.c.bf16 %v460_v49, %v458_v23  ;;  %v2114_v30 = vadd.f32 %v441_v24, %v2045_v1  ;;  %v1603_v24 = vld [vmem:[%s2565_s5 + $0x20] sm:$0xff] }
 0x2ba   :  { %v445_v29 = vadd.f32 %v444_v27, %v346_v26  ;;  %v446_v55 = vpop.f32.mrb[19].mxu0  ;;  %v461_v1 = vmax.f32 %v2117_v32, 0.0 }
 0x2bb   :  { %v447_v31 = vadd.f32 %v446_v55, %v346_v26  ;;  %1666 = vmatprep.subr.bf16.mxu1 %v1665_v52  ;;  %v462_v36 = vmax.f32 %v2114_v30, 0.0  ;;  %v2179_v26 = vand.u32 127, %v2570_v4 }
 0x2bc   :  { %v2120_v33 = vadd.f32 %v445_v29, %v2049_v8  ;;  %1668 = vmatpush1.bf16.msra.mxu1 %v1667_v28  ;;  %v1592_v8 = vld [vmem:[%s2563_s3 + $0x28] sm:$0xff] }
 0x2bd   :  { %v2123_v34 = vadd.f32 %v447_v31, %v2051_v10  ;;  %v1593_v10 = vld [vmem:[%s2563_s3 + $0x30] sm:$0xff]  ;;  %vm1203_vm6 = vcmp.lt.s32.totalorder %v2179_v26, 4 }
 0x2be   :  { %v463_v35 = vmax.f32 %v2120_v33, 0.0 }
 0x2bf   :  { %v464_v37 = vmax.f32 %v2123_v34, 0.0 }
 0x2c0   :  { %v1671_v39 = vpack.c.bf16 %v463_v35, %v461_v1 }
 0x2c1   :  { %v1669_v38 = vpack.c.bf16 %v464_v37, %v462_v36 }
 0x2c3   :  { %1670 = vmatprep.subr.bf16.mxu1 %v1669_v38 }
 0x2c4   :  { %1672 = vmatpush1.bf16.msra.mxu1 %v1671_v39  ;;  %v617_v39 = vpop.permute.xlu0 %616 }
 0x2c7   :  { %1599 = vmatmul.mubr.msk.f32.vlgmr.msra.gmra.mrb[4].mxu1 %vm210_vm4, %v1591_v5 }
 0x2c8   :  { %577 = vmatprep.mubr.f32.mxu1 %v2571_v7 }
 0x2cb   :  { %1600 = vmatmul.mubr.msk.f32.gmra.mrb[6].mxu1 %vm210_vm4, %v1592_v8 }
 0x2cc   :  { %583 = vmatprep.mubr.f32.mxu1 %v2571_v7 }
 0x2cf   :  { %1601 = vmatmul.mubr.msk.f32.gmra.mrb[8].mxu1 %vm210_vm4, %v1593_v10 }
 0x2d0   :  { %589 = vmatprep.mubr.f32.mxu1 %v2571_v7 }
 0x2d3   :  { %1602 = vmatmul.mubr.msk.f32.gmra.mrb[10].mxu1 %vm210_vm4, %v1594_v40 }
 0x2d4   :  { %935 = vmatprep.mubr.f32.mxu1 %v2571_v7 }
 0x39a   :  { %v573_v41 = vpop.f32.mrb[4].mxu1 }
 0x39b   :  { %v575_v42 = vpop.f32.mrb[5].mxu1  ;;  %v574_v44 = vadd.f32 %v573_v41, %v478_v43  ;;  %v622_v41 = vpop.permute.xlu1 %621 }
 0x39c   :  { %v576_v46 = vadd.f32 %v575_v42, %v478_v43 }
 0x39d   :  { %v596_v54 = vmax.f32 %v574_v44, 0.0 }
 0x39e   :  { %v579_v47 = vpop.f32.mrb[6].mxu1  ;;  %v597_v57 = vmax.f32 %v576_v46, 0.0 }
 0x39f   :  { %v580_v48 = vadd.f32 %v579_v47, %v483_v45  ;;  %v581_v50 = vpop.f32.mrb[7].mxu1 }
 0x3a0   :  { %v582_v53 = vadd.f32 %v581_v50, %v483_v45  ;;  %v627_v50 = vpop.permute.xlu0 %626 }
 0x3a1   :  { %v598_v56 = vmax.f32 %v580_v48, 0.0 }
 0x3a2   :  { %v599_v58 = vmax.f32 %v582_v53, 0.0  ;;  %v585_v59 = vpop.f32.mrb[8].mxu1 }
 0x3a3   :  { %v1675_v60 = vpack.c.bf16 %v598_v56, %v596_v54  ;;  %v587_v61 = vpop.f32.mrb[9].mxu1  ;;  %v586_v0 = vadd.f32 %v585_v59, %v488_v62 }
 0x3a4   :  { %v1673_v63 = vpack.c.bf16 %v599_v58, %v597_v57  ;;  %v588_v9 = vadd.f32 %v587_v61, %v488_v62 }
 0x3a5   :  { %v600_v19 = vmax.f32 %v586_v0, 0.0 }
 0x3a6   :  { %v591_v11 = vpop.f32.mrb[10].mxu1  ;;  %1674 = vmatprep.subr.bf16.mxu0 %v1673_v63  ;;  %v601_v21 = vmax.f32 %v588_v9, 0.0 }
 0x3a7   :  { %v592_v12 = vadd.f32 %v591_v11, %v493_v2  ;;  %v593_v13 = vpop.f32.mrb[11].mxu1  ;;  %1676 = vmatpush1.bf16.msra.mxu0 %v1675_v60 }
 0x3a8   :  { %v594_v15 = vadd.f32 %v593_v13, %v493_v2 }
 0x3a9   :  { %v602_v20 = vmax.f32 %v592_v12, 0.0 }
 0x3aa   :  { %v603_v22 = vmax.f32 %v594_v15, 0.0 }
 0x3ab   :  { %v1679_v23 = vpack.c.bf16 %v602_v20, %v600_v19 }
 0x3ac   :  { %v1677_v49 = vpack.c.bf16 %v603_v22, %v601_v21 }
 0x3ae   :  { %1678 = vmatprep.subr.bf16.mxu0 %v1677_v49  ;;  %v755_v49 = vld [vmem:[%s2567_s7 + $0x20] sm:$0xff] }
 0x3af   :  { %1680 = vmatpush1.bf16.msra.mxu0 %v1679_v23 }
 0x3b0   :  { %1691 = vmatprep.subr.msk.bf16.mxu0 %vm1900_vm2, %v1898_v3  ;;  %v1605_v3 = vld [vmem:[%s2565_s5 + $0x30] sm:$0xff] }
 0x3b2   :  { %1611 = vmatmul.mubr.msk.f32.vlgmr.msra.gmra.mrb[20].mxu0 %vm210_vm4, %v1603_v24  ;;  %v756_v24 = vld [vmem:[%s2567_s7 + $0x28] sm:$0xff] }
 0x3b3   :  { %716 = vmatprep.mubr.f32.mxu0 %v2571_v7  ;;  %1694 = vmatpush1.bf16.msk.msra.mxu0 %vm1900_vm2, %v1907_v6  ;;  %v2176_v6 = vshrl.u32 %v2570_v4, 7 }
 0x3b5   :  { %2575 = vst [vmem:[#allocation5_spill] sm:$0xff] %v2176_v6  ;;  %v1155_v27 = vand.u32 7, %v2176_v6  ;;  %v1146_v52 = vadd.s32 8, %v2176_v6  ;;  %v1147_v55 = vadd.s32 16, %v2176_v6  ;;  %v1148_v36 = vadd.s32 24, %v2176_v6 }
 0x3b6   :  { %1612 = vmatmul.mubr.msk.f32.gmra.mrb[22].mxu0 %vm210_vm4, %v1604_v25  ;;  %v757_v25 = vld [vmem:[%s2567_s7 + $0x30] sm:$0xff] }
 0x3b7   :  { %722 = vmatprep.mubr.f32.mxu0 %v2571_v7  ;;  %vm1199_vm5 = vcmp.eq.s32.totalorder %v1155_v27, %v2179_v26  ;;  %v1162_v29 = vand.u32 7, %v1146_v52  ;;  %v1169_v35 = vand.u32 7, %v1147_v55  ;;  %v1176_v1 = vand.u32 7, %v1148_v36  ;;  %v760_v27 = vld [vmem:[%s2567_s7 + $0x48] sm:$0xff]  ;;  %v761_v52 = vld [vmem:[%s2567_s7 + $0x50] sm:$0xff] }
 0x3b8   :  { %vm1204_vm7 = vmand %vm1199_vm5, %vm1203_vm6 }
 0x3b9   :  { %v1208_v28 = vsel %vm1204_vm7, 1.0, %v2571_v7  ;;  %vm1200_vm8 = vcmp.eq.s32.totalorder %v1162_v29, %v2179_v26  ;;  %vm1201_vm10 = vcmp.eq.s32.totalorder %v1169_v35, %v2179_v26  ;;  %vm1202_vm12 = vcmp.eq.s32.totalorder %v1176_v1, %v2179_v26 }
 0x3ba   :  { %1613 = vmatmul.mubr.msk.f32.gmra.mrb[24].mxu0 %vm210_vm4, %v1605_v3  ;;  %vm1205_vm9 = vmand %vm1200_vm8, %vm1203_vm6  ;;  %v758_v3 = vld [vmem:[%s2567_s7 + $0x38] sm:$0xff] }
 0x3bb   :  { %728 = vmatprep.mubr.f32.mxu0 %v2571_v7  ;;  %v1209_v31 = vsel %vm1205_vm9, 1.0, %v2571_v7  ;;  %vm1206_vm11 = vmand %vm1201_vm10, %vm1203_vm6 }
 0x3bc   :  { %v1210_v37 = vsel %vm1206_vm11, 1.0, %v2571_v7  ;;  %vm1207_vm13 = vmand %vm1202_vm12, %vm1203_vm6 }
 0x3bd   :  { %v1211_v38 = vsel %vm1207_vm13, 1.0, %v2571_v7 }
 0x3be   :  { %1614 = vmatmul.mubr.msk.f32.gmra.mrb[26].mxu0 %vm210_vm4, %v1606_v51  ;;  %v759_v51 = vld [vmem:[%s2567_s7 + $0x40] sm:$0xff] }
 0x3bf   :  { %1288 = vmatprep.mubr.f32.mxu0 %v2571_v7 }
 0x3c2   :  { %1629 = vmatmul.mubr.msk.f32.vlgmr.msra.gmra.mrb[28].mxu0 %vm65_vm3, %v1208_v28  ;;  %v762_v28 = vld [vmem:[%s2567_s7 + $0x58] sm:$0xff] }
 0x3c3   :  { %1294 = vmatprep.mubr.f32.mxu0 %v2571_v7 }
 0x3c6   :  { %1630 = vmatmul.mubr.msk.f32.gmra.mrb[30].mxu0 %vm65_vm3, %v1209_v31 }
 0x3c7   :  { %1300 = vmatprep.mubr.f32.mxu0 %v2571_v7 }
 0x3ca   :  { %1631 = vmatmul.mubr.msk.f32.gmra.mrb[32].mxu0 %vm65_vm3, %v1210_v37 }
 0x3cb   :  { %1306 = vmatprep.mubr.f32.mxu0 %v2571_v7 }
 0x3ce   :  { %1632 = vmatmul.mubr.msk.f32.gmra.mrb[34].mxu0 %vm65_vm3, %v1211_v38 }
 0x3cf   :  { %1533 = vmatprep.mubr.f32.mxu0 %v2571_v7 }
 0x485   :  { %v712_v5 = vpop.f32.mrb[20].mxu0 }
 0x486   :  { %v713_v8 = vadd.f32 %v712_v5, %v617_v39  ;;  %v714_v10 = vpop.f32.mrb[21].mxu0 }
 0x487   :  { %v715_v40 = vadd.f32 %v714_v10, %v617_v39  ;;  %v2293_v39 = vpop.permute.xlu0 %817 }
 0x488   :  { %v735_v43 = vadd.f32 %v713_v8, %v2101_v16  ;;  %v632_v16 = vpop.permute.xlu1 %631 }
 0x489   :  { %v718_v42 = vpop.f32.mrb[22].mxu0  ;;  %v736_v46 = vadd.f32 %v715_v40, %v2098_v14 }
 0x48a   :  { %v719_v44 = vadd.f32 %v718_v42, %v622_v41  ;;  %v720_v45 = vpop.f32.mrb[23].mxu0  ;;  %v743_v56 = vmax.f32 %v735_v43, 0.0 }
 0x48b   :  { %v721_v47 = vadd.f32 %v720_v45, %v622_v41  ;;  %v744_v60 = vmax.f32 %v736_v46, 0.0  ;;  %v2297_v8 = vpop.permute.xlu0 %827 }
 0x48c   :  { %v737_v48 = vadd.f32 %v719_v44, %v2104_v17  ;;  %v2295_v5 = vpop.permute.xlu1 %822 }
 0x48d   :  { %v738_v53 = vadd.f32 %v721_v47, %v2107_v18  ;;  %v724_v54 = vpop.f32.mrb[24].mxu0 }
 0x48e   :  { %v745_v57 = vmax.f32 %v737_v48, 0.0  ;;  %v725_v58 = vadd.f32 %v724_v54, %v627_v50  ;;  %v726_v59 = vpop.f32.mrb[25].mxu0 }
 0x48f   :  { %v746_v61 = vmax.f32 %v738_v53, 0.0  ;;  %v727_v62 = vadd.f32 %v726_v59, %v627_v50  ;;  %v798_v40 = vpop.permute.xlu0 %797 }
 0x490   :  { %v1683_v63 = vpack.c.bf16 %v745_v57, %v743_v56  ;;  %v739_v14 = vadd.f32 %v725_v58, %v2117_v32  ;;  %v751_v32 = vld [vmem:[%s2567_s7] sm:$0xff]  ;;  %v2299_v10 = vpop.permute.xlu1 %832 }
 0x491   :  { %v730_v0 = vpop.f32.mrb[26].mxu0  ;;  %v1681_v2 = vpack.c.bf16 %v746_v61, %v744_v60  ;;  %v740_v17 = vadd.f32 %v727_v62, %v2114_v30  ;;  %v752_v30 = vld [vmem:[%s2567_s7 + $0x8] sm:$0xff] }
 0x492   :  { %v731_v9 = vadd.f32 %v730_v0, %v632_v16  ;;  %v732_v11 = vpop.f32.mrb[27].mxu0  ;;  %v747_v15 = vmax.f32 %v739_v14, 0.0 }
 0x493   :  { %v733_v12 = vadd.f32 %v732_v11, %v632_v16  ;;  %1682 = vmatprep.subr.bf16.mxu1 %v1681_v2  ;;  %v748_v20 = vmax.f32 %v740_v17, 0.0  ;;  %v2301_v42 = vpop.permute.xlu0 %807 }
 0x494   :  { %v741_v18 = vadd.f32 %v731_v9, %v2120_v33  ;;  %1684 = vmatpush1.bf16.msra.mxu1 %v1683_v63  ;;  %v753_v33 = vld [vmem:[%s2567_s7 + $0x10] sm:$0xff]  ;;  %v803_v41 = vpop.permute.xlu1 %802 }
 0x495   :  { %v742_v13 = vadd.f32 %v733_v12, %v2123_v34  ;;  %v754_v34 = vld [vmem:[%s2567_s7 + $0x18] sm:$0xff]  ;;  %v2277_v29 = vpop.f32.mrb[28].mxu0  ;;  %s1838_s7 = smov [#allocation2]  }
 0x496   :  { %v749_v19 = vmax.f32 %v741_v18, 0.0  ;;  %v2279_v55 = vpop.f32.mrb[29].mxu0  ;;  %s1569_s15 = sshll.u32 %s1838_s7, 4  ;;  %s1570_s15 = int_to_ptr.vmem [resolvable:$true] %s1569_s15 }
 0x497   :  { %v750_v21 = vmax.f32 %v742_v13, 0.0  ;;  %v778_v46 = vpop.permute.xlu0 %777  ;;  %s1810_s8 = scalar_lea.vmem %s1570_s15, 32  ;;  %p1815_p1 = scmp.lt.s32.totalorder %s1570_s15, %s1570_s15 }
 0x498   :  { %v1687_v22 = vpack.c.bf16 %v749_v19, %v747_v15  ;;  %v2303_v43 = vpop.permute.xlu1 %812  ;;  %p1811_p0 = scmp.ne.s32.totalorder %s1570_s15, %s1810_s8  ;;  %p1816_p2 = scmp.lt.s32.totalorder %s1810_s8, %s1810_s8 }
 0x499   :  { %v1685_v23 = vpack.c.bf16 %v750_v21, %v748_v20  ;;  %v2281_v31 = vpop.f32.mrb[30].mxu0 }
 0x49a   :  { %v2283_v35 = vpop.f32.mrb[31].mxu0  ;;  %p1817_p3 = por %p1816_p2, %p1815_p1 }
 0x49b   :  { %1686 = vmatprep.subr.bf16.mxu1 %v1685_v23  ;;  %v788_v59 = vpop.permute.xlu0 %787 }
 0x49c   :  { %1688 = vmatpush1.bf16.msra.mxu1 %v1687_v22  ;;  %v783_v47 = vpop.permute.xlu1 %782  ;;  %p1818_p4 = pnand %p1817_p3, %p1811_p0 }
 0x49d   :  { %v2285_v36 = vpop.f32.mrb[32].mxu0 }
 0x49e   :  { %v2287_v37 = vpop.f32.mrb[33].mxu0 }
 0x49f   :  { %1615 = vmatmul.mubr.msk.f32.vlgmr.msra.gmra.mrb[12].mxu1 %vm210_vm4, %v751_v32 }
 0x4a0   :  { %941 = vmatprep.mubr.f32.mxu1 %v2571_v7  ;;  %v793_v2 = vpop.permute.xlu1 %792 }
 0x4a1   :  { %v2289_v1 = vpop.f32.mrb[34].mxu0 }
 0x4a2   :  { %v2291_v38 = vpop.f32.mrb[35].mxu0 }
 0x4a3   :  { %1616 = vmatmul.mubr.msk.f32.gmra.mrb[14].mxu1 %vm210_vm4, %v752_v30 }
 0x4a4   :  { %947 = vmatprep.mubr.f32.mxu1 %v2571_v7 }
 0x4a7   :  { %1617 = vmatmul.mubr.msk.f32.gmra.mrb[16].mxu1 %vm210_vm4, %v753_v33 }
 0x4a8   :  { %953 = vmatprep.mubr.f32.mxu1 %v2571_v7 }
 0x4ab   :  { %1618 = vmatmul.mubr.msk.f32.gmra.mrb[18].mxu1 %vm210_vm4, %v754_v34 }
 0x4ac   :  { %959 = vmatprep.mubr.f32.mxu1 %v2571_v7 }
 0x4af   :  { %1619 = vmatmul.mubr.msk.f32.gmra.mrb[20].mxu1 %vm210_vm4, %v755_v49 }
 0x4b0   :  { %965 = vmatprep.mubr.f32.mxu1 %v2571_v7 }
 0x4b3   :  { %1620 = vmatmul.mubr.msk.f32.gmra.mrb[22].mxu1 %vm210_vm4, %v756_v24 }
 0x4b4   :  { %971 = vmatprep.mubr.f32.mxu1 %v2571_v7 }
 0x4b7   :  { %1621 = vmatmul.mubr.msk.f32.gmra.mrb[24].mxu1 %vm210_vm4, %v757_v25 }
 0x4b8   :  { %977 = vmatprep.mubr.f32.mxu1 %v2571_v7 }
 0x4bb   :  { %1622 = vmatmul.mubr.msk.f32.gmra.mrb[26].mxu1 %vm210_vm4, %v758_v3 }
 0x4bc   :  { %983 = vmatprep.mubr.f32.mxu1 %v2571_v7 }
 0x4bf   :  { %1623 = vmatmul.mubr.msk.f32.gmra.mrb[28].mxu1 %vm210_vm4, %v759_v51 }
 0x4c0   :  { %989 = vmatprep.mubr.f32.mxu1 %v2571_v7 }
 0x4c3   :  { %1624 = vmatmul.mubr.msk.f32.gmra.mrb[30].mxu1 %vm210_vm4, %v760_v27 }
 0x4c4   :  { %995 = vmatprep.mubr.f32.mxu1 %v2571_v7 }
 0x4c7   :  { %1625 = vmatmul.mubr.msk.f32.gmra.mrb[32].mxu1 %vm210_vm4, %v761_v52 }
 0x4c8   :  { %1001 = vmatprep.mubr.f32.mxu1 %v2571_v7 }
 0x4cb   :  { %1626 = vmatmul.mubr.msk.f32.gmra.mrb[34].mxu1 %vm210_vm4, %v762_v28 }
 0x572   :  { %v937_v44 = vpop.f32.mrb[12].mxu1 }
 0x573   :  { %v939_v45 = vpop.f32.mrb[13].mxu1  ;;  %v2305_v50 = vadd.f32 %v937_v44, %v778_v46 }
 0x574   :  { %v2309_v56 = vadd.f32 %v939_v45, %v778_v46 }
 0x576   :  { %v943_v48 = vpop.f32.mrb[14].mxu1 }
 0x577   :  { %v2307_v53 = vadd.f32 %v943_v48, %v783_v47  ;;  %v945_v54 = vpop.f32.mrb[15].mxu1 }
 0x578   :  { %v2311_v57 = vadd.f32 %v945_v54, %v783_v47 }
 0x579   :  { %v1419_v58 = vmax.f32 %v2305_v50, %v2307_v53 }
 0x57a   :  { %v1420_v60 = vmax.f32 %v2309_v56, %v2311_v57  ;;  %v949_v61 = vpop.f32.mrb[16].mxu1 }
 0x57b   :  { %v2317_v62 = vadd.f32 %v949_v61, %v788_v59  ;;  %v951_v63 = vpop.f32.mrb[17].mxu1 }
 0x57c   :  { %v2319_v16 = vadd.f32 %v951_v63, %v788_v59 }
 0x57d   :  { %v1421_v0 = vmax.f32 %v1419_v58, %v2317_v62 }
 0x57e   :  { %v1422_v14 = vmax.f32 %v1420_v60, %v2319_v16  ;;  %v955_v9 = vpop.f32.mrb[18].mxu1 }
 0x57f   :  { %v2323_v11 = vadd.f32 %v955_v9, %v793_v2  ;;  %v957_v17 = vpop.f32.mrb[19].mxu1 }
 0x580   :  { %v2325_v12 = vadd.f32 %v957_v17, %v793_v2 }
 0x581   :  { %v2328_v18 = vmax.f32 %v1421_v0, %v2323_v11 }
 0x582   :  { %v2331_v13 = vmax.f32 %v1422_v14, %v2325_v12  ;;  %v961_v15 = vpop.f32.mrb[20].mxu1 }
 0x583   :  { %v1425_v19 = vsub.f32 %v2305_v50, %v2328_v18  ;;  %v1431_v20 = vsub.f32 %v2307_v53, %v2328_v18  ;;  %v1439_v21 = vsub.f32 %v2317_v62, %v2328_v18  ;;  %v1447_v22 = vsub.f32 %v2323_v11, %v2328_v18  ;;  %v963_v23 = vpop.f32.mrb[21].mxu1 }
 0x584   :  { %v1426_v32 = vsub.f32 %v2309_v56, %v2331_v13  ;;  %v1432_v30 = vsub.f32 %v2311_v57, %v2331_v13  ;;  %v1440_v33 = vsub.f32 %v2319_v16, %v2331_v13  ;;  %v1448_v34 = vsub.f32 %v2325_v12, %v2331_v13 }
 0x585   :  { %v1427_v49 = vmul.f32 1.442695, %v1425_v19  ;;  %v1433_v24 = vmul.f32 1.442695, %v1431_v20  ;;  %v1441_v25 = vmul.f32 1.442695, %v1439_v21  ;;  %v2349_v3 = vadd.f32 %v961_v15, %v798_v40 }
 0x586   :  { %v1449_v51 = vmul.f32 1.442695, %v1447_v22  ;;  %v2351_v27 = vadd.f32 %v963_v23, %v798_v40  ;;  %v1429_v52 = vmul.f32 1.442695, %v1426_v32  ;;  %v967_v44 = vpop.f32.mrb[22].mxu1 }
 0x587   :  { %1706 = vpow2.f32 %v1427_v49  ;;  %v1435_v45 = vmul.f32 1.442695, %v1432_v30  ;;  %v2357_v47 = vadd.f32 %v967_v44, %v803_v41  ;;  %v969_v48 = vpop.f32.mrb[23].mxu1  ;;  %v1443_v40 = vmul.f32 1.442695, %v1440_v33 }
 0x588   :  { %1708 = vpow2.f32 %v1433_v24  ;;  %v2359_v54 = vadd.f32 %v969_v48, %v803_v41  ;;  %v1451_v0 = vmul.f32 1.442695, %v1448_v34 }
 0x589   :  { %1710 = vpow2.f32 %v1441_v25 }
 0x58a   :  { %1712 = vpow2.f32 %v1449_v51  ;;  %v973_v59 = vpop.f32.mrb[24].mxu1 }
 0x58b   :  { %1714 = vpow2.f32 %v1429_v52  ;;  %v2366_v61 = vadd.f32 %v973_v59, %v2301_v42  ;;  %v975_v63 = vpop.f32.mrb[25].mxu1 }
 0x58c   :  { %1716 = vpow2.f32 %v1435_v45  ;;  %v2369_v2 = vadd.f32 %v975_v63, %v2301_v42 }
 0x58d   :  { %1718 = vpow2.f32 %v1443_v40 }
 0x58e   :  { %v979_v9 = vpop.f32.mrb[26].mxu1  ;;  %1720 = vpow2.f32 %v1451_v0 }
 0x58f   :  { %v2376_v17 = vadd.f32 %v979_v9, %v2303_v43  ;;  %v981_v15 = vpop.f32.mrb[27].mxu1 }
 0x590   :  { %v2379_v19 = vadd.f32 %v981_v15, %v2303_v43 }
 0x591   :  { %v1707_v20 = vpop.eup %1706 }
 0x592   :  { %v1709_v21 = vpop.eup %1708  ;;  %v985_v23 = vpop.f32.mrb[28].mxu1 }
 0x593   :  { %v1711_v32 = vpop.eup %1710  ;;  %v2386_v30 = vadd.f32 %v985_v23, %v2293_v39  ;;  %v987_v33 = vpop.f32.mrb[29].mxu1  ;;  %v1437_v34 = vadd.f32 %v1709_v21, %v1707_v20 }
 0x594   :  { %v1713_v49 = vpop.eup %1712  ;;  %v2389_v24 = vadd.f32 %v987_v33, %v2293_v39 }
 0x595   :  { %v1715_v43 = vpop.eup %1714  ;;  %v1016_v25 = vmin.f32 %v2386_v30, 20.0  ;;  %v1445_v51 = vadd.f32 %v1711_v32, %v1437_v34  ;;  %vm1008_vm14 = vcmp.gt.f32.partialorder %v2386_v30, 20.0 }
 0x596   :  { %v1717_v52 = vpop.eup %1716  ;;  %v1017_v44 = vmin.f32 %v2389_v24, 20.0  ;;  %v991_v45 = vpop.f32.mrb[30].mxu1  ;;  %vm1009_vm15 = vcmp.gt.f32.partialorder %v2389_v24, 20.0 }
 0x597   :  { %v1024_v48 = vmul.f32 1.442695, %v1016_v25  ;;  %v2394_v40 = vadd.f32 %v991_v45, %v2295_v5  ;;  %v993_v59 = vpop.f32.mrb[31].mxu1  ;;  %v1438_v63 = vadd.f32 %v1717_v52, %v1715_v43  ;;  %v1453_v0 = vadd.f32 %v1713_v49, %v1445_v51  ;;  %v1719_v9 = vpop.eup %1718 }
 0x598   :  { %v1026_v15 = vmul.f32 1.442695, %v1017_v44  ;;  %v2397_v39 = vadd.f32 %v993_v59, %v2295_v5  ;;  %v1721_v23 = vpop.eup %1720 }
 0x599   :  { %1722 = vpow2.f32 %v1024_v48  ;;  %v1018_v20 = vmin.f32 %v2394_v40, 20.0  ;;  %v1446_v21 = vadd.f32 %v1719_v9, %v1438_v63  ;;  %vm1010_vm1 = vcmp.gt.f32.partialorder %v2394_v40, 20.0 }
 0x59a   :  { %1724 = vpow2.f32 %v1026_v15  ;;  %v1019_v32 = vmin.f32 %v2397_v39, 20.0  ;;  %v997_v33 = vpop.f32.mrb[32].mxu1  ;;  %vm1011_vm4 = vcmp.gt.f32.partialorder %v2397_v39, 20.0 }
 0x59b   :  { %v1028_v34 = vmul.f32 1.442695, %v1018_v20  ;;  %v2402_v25 = vadd.f32 %v997_v33, %v2297_v8  ;;  %v999_v43 = vpop.f32.mrb[33].mxu1  ;;  %v1454_v49 = vadd.f32 %v1721_v23, %v1446_v21  ;;  %1726 = vlog2.f32 %v1453_v0 }
 0x59c   :  { %v1030_v51 = vmul.f32 1.442695, %v1019_v32  ;;  %v2405_v5 = vadd.f32 %v999_v43, %v2297_v8 }
 0x59d   :  { %1728 = vpow2.f32 %v1028_v34  ;;  %v1020_v52 = vmin.f32 %v2402_v25, 20.0  ;;  %vm1012_vm7 = vcmp.gt.f32.partialorder %v2402_v25, 20.0 }
 0x59e   :  { %1730 = vpow2.f32 %v1030_v51  ;;  %v1021_v44 = vmin.f32 %v2405_v5, 20.0  ;;  %v1003_v45 = vpop.f32.mrb[34].mxu1  ;;  %vm1013_vm9 = vcmp.gt.f32.partialorder %v2405_v5, 20.0 }
 0x59f   :  { %v1032_v48 = vmul.f32 1.442695, %v1020_v52  ;;  %v2410_v59 = vadd.f32 %v1003_v45, %v2299_v10  ;;  %v1005_v63 = vpop.f32.mrb[35].mxu1  ;;  %1732 = vlog2.f32 %v1454_v49 }
 0x5a0   :  { %v1034_v9 = vmul.f32 1.442695, %v1021_v44  ;;  %v2414_v33 = vadd.f32 %v1005_v63, %v2299_v10 }
 0x5a1   :  { %1734 = vpow2.f32 %v1032_v48  ;;  %v1022_v0 = vmin.f32 %v2410_v59, 20.0  ;;  %vm1014_vm12 = vcmp.gt.f32.partialorder %v2410_v59, 20.0 }
 0x5a2   :  { %1736 = vpow2.f32 %v1034_v9  ;;  %v1023_v9 = vmin.f32 %v2414_v33, 20.0  ;;  %vm1015_vm13 = vcmp.gt.f32.partialorder %v2414_v33, 20.0 }
 0x5a3   :  { %v1723_v8 = vpop.eup %1722  ;;  %v1036_v15 = vmul.f32 1.442695, %v1022_v0 }
 0x5a4   :  { %v1725_v20 = vpop.eup %1724  ;;  %v1040_v21 = vadd.f32 1.0, %v1723_v8  ;;  %v1043_v51 = vmul.f32 -0.5, %v1723_v8  ;;  %v1046_v10 = vand.u32 2147483647, %v1723_v8 }
 0x5a5   :  { %v1727_v23 = vpop.eup %1726  ;;  %v1049_v32 = vadd.f32 1.0, %v1725_v20  ;;  %1738 = vpow2.f32 %v1036_v15  ;;  %v1052_v45 = vmul.f32 -0.5, %v1725_v20  ;;  %v1055_v4 = vand.u32 2147483647, %v1725_v20 }
 0x5a6   :  { %1740 = vlog2.f32 %v1040_v21  ;;  %v1456_v43 = vmul.f32 0.6931472, %v1727_v23  ;;  %vm2435_vm0 = vcmp.lt.f32.partialorder %v1046_v10, 0.0004427343 }
 0x5a7   :  { %v1729_v34 = vpop.eup %1728  ;;  %1742 = vlog2.f32 %v1049_v32  ;;  %v1044_v32 = vadd.f32 1.0, %v1043_v51  ;;  %vm2440_vm2 = vcmp.lt.f32.partialorder %v1055_v4, 0.0004427343 }
 0x5a8   :  { %v2416_v49 = vpop.eup %1730  ;;  %v1058_v52 = vadd.f32 1.0, %v1729_v34  ;;  %v1061_v63 = vmul.f32 -0.5, %v1729_v34  ;;  %v2422_v21 = vadd.f32 %v1456_v43, %v2328_v18  ;;  %v1064_v7 = vand.u32 2147483647, %v1729_v34 }
 0x5a9   :  { %v1733_v44 = vpop.eup %1732  ;;  %v1067_v48 = vadd.f32 1.0, %v2416_v49  ;;  %v1073_v14 = vand.u32 2147483647, %v2416_v49  ;;  %v1045_v58 = vmul.f32 %v1723_v8, %v1044_v32 }
 0x5aa   :  { %1744 = vlog2.f32 %v1058_v52  ;;  %v1458_v0 = vmul.f32 0.6931472, %v1733_v44  ;;  %v1053_v52 = vadd.f32 1.0, %v1052_v45  ;;  %v1070_v44 = vmul.f32 -0.5, %v2416_v49 }
 0x5ab   :  { %v1735_v15 = vpop.eup %1734  ;;  %1746 = vlog2.f32 %v1067_v48  ;;  %v1038_v48 = vmul.f32 1.442695, %v1023_v9  ;;  %v1062_v45 = vadd.f32 1.0, %v1061_v63  ;;  %vm2444_vm3 = vcmp.lt.f32.partialorder %v1064_v7, 0.0004427343 }
 0x5ac   :  { %v2424_v23 = vpop.eup %1736  ;;  %v1076_v22 = vadd.f32 1.0, %v1735_v15  ;;  %v2431_v18 = vadd.f32 %v1458_v0, %v2331_v13  ;;  %v1079_v41 = vmul.f32 -0.5, %v1735_v15  ;;  %v1054_v10 = vmul.f32 %v1725_v20, %v1053_v52 }
 0x5ad   :  { %v1085_v42 = vadd.f32 1.0, %v2424_v23  ;;  %v1071_v63 = vadd.f32 1.0, %v1070_v44  ;;  %v1082_v28 = vand.u32 2147483647, %v1735_v15  ;;  %vm2450_vm5 = vcmp.lt.f32.partialorder %v1073_v14, 0.0004427343 }
 0x5ae   :  { %1748 = vlog2.f32 %v1076_v22  ;;  %v1088_v4 = vmul.f32 -0.5, %v2424_v23  ;;  %v1063_v32 = vmul.f32 %v1729_v34, %v1062_v45  ;;  %v1080_v6 = vadd.f32 1.0, %v1079_v41 }
 0x5af   :  { %v2433_v43 = vpop.eup %1738  ;;  %1750 = vlog2.f32 %v1085_v42  ;;  %vm2468_vm8 = vcmp.lt.f32.partialorder %v1082_v28, 0.0004427343 }
 0x5b0   :  { %v1741_v60 = vpop.eup %1740  ;;  %v1094_v22 = vadd.f32 1.0, %v2433_v43  ;;  %v1097_v44 = vmul.f32 -0.5, %v2433_v43  ;;  %v1089_v46 = vadd.f32 1.0, %v1088_v4 }
 0x5b1   :  { %v1743_v9 = vpop.eup %1742  ;;  %v1042_v0 = vmul.f32 0.6931472, %v1741_v60  ;;  %v1091_v60 = vand.u32 2147483647, %v2424_v23 }
 0x5b2   :  { %v1051_v42 = vmul.f32 0.6931472, %v1743_v9  ;;  %1752 = vlog2.f32 %v1094_v22  ;;  %v1090_v4 = vmul.f32 %v2424_v23, %v1089_v46 }
 0x5b3   :  { %v1048_v7 = vsel %vm2435_vm0, %v1045_v58, %v1042_v0  ;;  %1754 = vpow2.f32 %v1038_v48  ;;  %v1081_v0 = vmul.f32 %v1735_v15, %v1080_v6  ;;  %vm1092_vm10 = vcmp.lt.f32.partialorder %v1091_v60, 0.0004427343 }
 0x5b4   :  { %v1745_v20 = vpop.eup %1744  ;;  %v1112_v14 = vsel %vm1008_vm14, %v2386_v30, %v1048_v7  ;;  %v1057_v52 = vsel %vm2440_vm2, %v1054_v10, %v1051_v42  ;;  %v1072_v30 = vmul.f32 %v2416_v49, %v1071_v63  ;;  %v1100_v10 = vand.u32 2147483647, %v2433_v43 }
 0x5b5   :  { %v1747_v22 = vpop.eup %1746  ;;  %v1120_v51 = vadd.f32 0.001, %v1112_v14  ;;  %v1113_v58 = vsel %vm1009_vm15, %v2389_v24, %v1057_v52  ;;  %v1060_v41 = vmul.f32 0.6931472, %v1745_v20  ;;  %v1098_v7 = vadd.f32 1.0, %v1097_v44 }
 0x5b6   :  { %v1121_v45 = vadd.f32 0.001, %v1113_v58  ;;  %v1069_v9 = vmul.f32 0.6931472, %v1747_v22  ;;  %vm1101_vm11 = vcmp.lt.f32.partialorder %v1100_v10, 0.0004427343 }
 0x5b7   :  { %1756 = vlog2.f32 %v1120_v51  ;;  %v1066_v48 = vsel %vm2444_vm3, %v1063_v32, %v1060_v41  ;;  %v1099_v14 = vmul.f32 %v2433_v43, %v1098_v7  ;;  %vm1465_vm15 = vcmask 64512  }
 0x5b8   :  { %v1749_v42 = vpop.eup %1748  ;;  %1758 = vrcp.f32 %v1120_v51  ;;  %v1114_v28 = vsel %vm1010_vm1, %v2394_v40, %v1066_v48  ;;  %v1075_v24 = vsel %vm2450_vm5, %v1072_v30, %v1069_v9 }
 0x5b9   :  { %v1751_v20 = vpop.eup %1750  ;;  %1760 = vlog2.f32 %v1121_v45  ;;  %v1122_v49 = vadd.f32 0.001, %v1114_v28  ;;  %v1115_v13 = vsel %vm1011_vm4, %v2397_v39, %v1075_v24  ;;  %v1078_v6 = vmul.f32 0.6931472, %v1749_v42 }
 0x5ba   :  { %1762 = vrcp.f32 %v1121_v45  ;;  %v1123_v15 = vadd.f32 0.001, %v1115_v13  ;;  %v1087_v63 = vmul.f32 0.6931472, %v1751_v20 }
 0x5bb   :  { %1764 = vlog2.f32 %v1122_v49  ;;  %v1084_v40 = vsel %vm2468_vm8, %v1081_v0, %v1078_v6  ;;  %v2587_v0 = vsub.f32 %v2279_v55, %v2351_v27  ;;  %v2589_v55 = vsub.f32 %v2283_v35, %v2359_v54 }
 0x5bc   :  { %v1753_v8 = vpop.eup %1752  ;;  %1766 = vrcp.f32 %v1122_v49  ;;  %v1116_v32 = vsel %vm1012_vm7, %v2402_v25, %v1084_v40  ;;  %v1093_v39 = vsel %vm1092_vm10, %v1090_v4, %v1087_v63 }
 0x5bd   :  { %1768 = vlog2.f32 %v1123_v15  ;;  %v1124_v52 = vadd.f32 0.001, %v1116_v32  ;;  %v1117_v23 = vsel %vm1013_vm9, %v2405_v5, %v1093_v39  ;;  %v1096_v44 = vmul.f32 0.6931472, %v1753_v8  ;;  %v1755_v22 = vpop.eup %1754 }
 0x5be   :  { %1770 = vrcp.f32 %v1123_v15  ;;  %v1125_v51 = vadd.f32 0.001, %v1117_v23  ;;  %v1103_v43 = vadd.f32 1.0, %v1755_v22  ;;  %v2586_v5 = vsub.f32 %v2277_v29, %v2349_v3 }
 0x5bf   :  { %1772 = vlog2.f32 %v1124_v52  ;;  %v1102_v60 = vsel %vm1101_vm11, %v1099_v14, %v1096_v44  ;;  %v1106_v42 = vmul.f32 -0.5, %v1755_v22  ;;  %v2588_v29 = vsub.f32 %v2281_v31, %v2357_v47 }
 0x5c0   :  { %1774 = vrcp.f32 %v1124_v52  ;;  %v1118_v58 = vsel %vm1014_vm12, %v2410_v59, %v1102_v60  ;;  %v1109_v39 = vand.u32 2147483647, %v1755_v22  ;;  %v2590_v60 = vsub.f32 %v2285_v36, %v2366_v61 }
 0x5c1   :  { %v1757_v25 = vpop.eup %1756  ;;  %1776 = vlog2.f32 %v1125_v51  ;;  %v1126_v41 = vadd.f32 0.001, %v1118_v58  ;;  %v1107_v32 = vadd.f32 1.0, %v1106_v42 }
 0x5c2   :  { %v1759_v34 = vpop.eup %1758  ;;  %1778 = vrcp.f32 %v1125_v51  ;;  %v1129_v24 = vmul.f32 0.6931472, %v1757_v25  ;;  %vm2515_vm14 = vcmp.lt.f32.partialorder %v1109_v39, 0.0004427343 }
 0x5c3   :  { %v1761_v45 = vpop.eup %1760  ;;  %v1322_v9 = vmul.f32 %v1759_v34, %v2586_v5  ;;  %1780 = vlog2.f32 %v1126_v41  ;;  %v2591_v5 = vsub.f32 %v2287_v37, %v2369_v2 }
 0x5c4   :  { %v1763_v30 = vpop.eup %1762  ;;  %1782 = vrcp.f32 %v1126_v41  ;;  %v1131_v13 = vmul.f32 0.6931472, %v1761_v45 }
 0x5c5   :  { %v1765_v46 = vpop.eup %1764  ;;  %v1337_v48 = vmul.f32 -0.5, %v1322_v9  ;;  %v1324_v59 = vmul.f32 %v1763_v30, %v2587_v0  ;;  %1784 = vlog2.f32 %v1103_v43  ;;  %v1108_v30 = vmul.f32 %v1755_v22, %v1107_v32 }
 0x5c6   :  { %v1767_v10 = vpop.eup %1766  ;;  %v1133_v8 = vmul.f32 0.6931472, %v1765_v46  ;;  %v2594_v0 = vsub.f32 %v2289_v1, %v2376_v17 }
 0x5c7   :  { %v1769_v28 = vpop.eup %1768  ;;  %v1345_v7 = vmul.f32 %v1337_v48, %v1322_v9  ;;  %v1338_v20 = vmul.f32 -0.5, %v1324_v59  ;;  %v1326_v3 = vmul.f32 %v1767_v10, %v2588_v29 }
 0x5c8   :  { %v1771_v49 = vpop.eup %1770  ;;  %v1135_v51 = vmul.f32 0.6931472, %v1769_v28 }
 0x5c9   :  { %v1773_v6 = vpop.eup %1772  ;;  %v1353_v15 = vsub.f32 %v1345_v7, %v1129_v24  ;;  %v1346_v63 = vmul.f32 %v1338_v20, %v1324_v59  ;;  %v1339_v4 = vmul.f32 -0.5, %v1326_v3  ;;  %v1328_v27 = vmul.f32 %v1771_v49, %v2589_v55 }
 0x5ca   :  { %v1775_v40 = vpop.eup %1774  ;;  %v1137_v10 = vmul.f32 0.6931472, %v1773_v6 }
 0x5cb   :  { %v1777_v14 = vpop.eup %1776  ;;  %v1633_v52 = vadd.f32 -0.9189385, %v1353_v15  ;;  %v1354_v23 = vsub.f32 %v1346_v63, %v1131_v13  ;;  %v1347_v44 = vmul.f32 %v1339_v4, %v1326_v3  ;;  %v1340_v31 = vmul.f32 -0.5, %v1328_v27 }
 0x5cc   :  { %v1779_v47 = vpop.eup %1778  ;;  %v1330_v58 = vmul.f32 %v1775_v40, %v2590_v60  ;;  %v1139_v24 = vmul.f32 0.6931472, %v1777_v14 }
 0x5cd   :  { %v1781_v25 = vpop.eup %1780  ;;  %v1369_v35 = vadd.f32 %v1633_v52, %v2305_v50  ;;  %v1634_v54 = vadd.f32 -0.9189385, %v1354_v23  ;;  %v1355_v41 = vsub.f32 %v1347_v44, %v1133_v8  ;;  %v1348_v43 = vmul.f32 %v1340_v31, %v1328_v27 }
 0x5ce   :  { %v1783_v34 = vpop.eup %1782  ;;  %v1341_v45 = vmul.f32 -0.5, %v1330_v58  ;;  %v1332_v9 = vmul.f32 %v1779_v47, %v2591_v5  ;;  %v1141_v3 = vmul.f32 0.6931472, %v1781_v25 }
 0x5cf   :  { %v1785_v36 = vpop.eup %1784  ;;  %v2520_v61 = vadd.f32 %v1634_v54, %v2309_v56  ;;  %v1635_v48 = vadd.f32 -0.9189385, %v1355_v41  ;;  %v1356_v50 = vsub.f32 %v1348_v43, %v1135_v51  ;;  %v1334_v59 = vmul.f32 %v1783_v34, %v2594_v0 }
 0x5d0   :  { %v1349_v42 = vmul.f32 %v1341_v45, %v1330_v58  ;;  %v1342_v28 = vmul.f32 -0.5, %v1332_v9  ;;  %v1105_v37 = vmul.f32 0.6931472, %v1785_v36 }
 0x5d1   :  { %v1371_v2 = vadd.f32 %v1635_v48, %v2307_v53  ;;  %v1636_v22 = vadd.f32 -0.9189385, %v1356_v50  ;;  %v1343_v7 = vmul.f32 -0.5, %v1334_v59 }
 0x5d2   :  { %v1357_v20 = vsub.f32 %v1349_v42, %v1137_v10  ;;  %v1350_v29 = vmul.f32 %v1342_v28, %v1332_v9  ;;  %v1111_v56 = vsel %vm2515_vm14, %v1108_v30, %v1105_v37 }
 0x5d3   :  { %v1377_v49 = vmax.f32 %v1369_v35, %v1371_v2  ;;  %v1372_v13 = vadd.f32 %v1636_v22, %v2311_v57  ;;  %v1351_v1 = vmul.f32 %v1343_v7, %v1334_v59  ;;  %v1119_v17 = vsel %vm1015_vm13, %v2414_v33, %v1111_v56 }
 0x5d4   :  { %v1637_v6 = vadd.f32 -0.9189385, %v1357_v20  ;;  %v1358_v15 = vsub.f32 %v1350_v29, %v1139_v24  ;;  %v1127_v53 = vadd.f32 0.001, %v1119_v17 }
 0x5d5   :  { %v1378_v63 = vmax.f32 %v2520_v61, %v1372_v13  ;;  %v1359_v4 = vsub.f32 %v1351_v1, %v1141_v3 }
 0x5d6   :  { %v1373_v55 = vadd.f32 %v1637_v6, %v2317_v62  ;;  %v1638_v27 = vadd.f32 -0.9189385, %v1358_v15  ;;  %1786 = vrcp.f32 %v1127_v53  ;;  %v2595_v62 = vsub.f32 %v2291_v38, %v2379_v19 }
 0x5d7   :  { %v1639_v40 = vadd.f32 -0.9189385, %v1359_v4  ;;  %1788 = vlog2.f32 %v1127_v53  ;;  %v2596_v15 = vmov 0.0  }
 0x5d8   :  { %v1379_v8 = vmax.f32 %v1377_v49, %v1373_v55  ;;  %v1374_v32 = vadd.f32 %v1638_v27, %v2319_v16  ;;  %v1641_v53 = vsel %vm1203_vm6, 1.0, %v2596_v15 }
 0x5d9   :  { %v1375_v57 = vadd.f32 %v1639_v40, %v2323_v11  ;;  %v2597_v40 = vld [vmem:[#allocation5_spill] sm:$0xff] }
 0x5da   :  { %v1380_v39 = vmax.f32 %v1378_v63, %v1374_v32  ;;  %v1837_v63 = vmov 1966171168  }
 0x5db   :  { %v1381_v14 = vmax.f32 %v1379_v8, %v1375_v57  ;;  %v1544_v4 = vunpack.c.l.s4 %v1837_v63 }
 0x5dd   :  { %v1383_v33 = vsub.f32 %v1369_v35, %v1381_v14  ;;  %v1389_v52 = vsub.f32 %v1371_v2, %v1381_v14  ;;  %v1405_v23 = vsub.f32 %v1375_v57, %v1381_v14  ;;  %v1397_v44 = vsub.f32 %v1373_v55, %v1381_v14 }
 0x5de   :  { %v1545_v55 = vunpack.c.0.s8 %v1544_v4 }
 0x5df   :  { %v1385_v31 = vmul.f32 1.442695, %v1383_v33  ;;  %v1391_v47 = vmul.f32 1.442695, %v1389_v52  ;;  %v1399_v58 = vmul.f32 1.442695, %v1397_v44 }
 0x5e0   :  { %v1787_v51 = vpop.eup %1786  ;;  %v1407_v16 = vmul.f32 1.442695, %v1405_v23  ;;  %v1548_v8 = vsub.s32 %v1545_v55, %v2597_v40 }
 0x5e1   :  { %v1336_v60 = vmul.f32 %v1787_v51, %v2595_v62  ;;  %1790 = vpow2.f32 %v1385_v31  ;;  %v1789_v25 = vpop.eup %1788 }
 0x5e2   :  { %1792 = vpow2.f32 %v1391_v47  ;;  %v1143_v54 = vmul.f32 0.6931472, %v1789_v25 }
 0x5e3   :  { %v1344_v11 = vmul.f32 -0.5, %v1336_v60  ;;  %1794 = vpow2.f32 %v1399_v58 }
 0x5e4   :  { %1796 = vpow2.f32 %v1407_v16 }
 0x5e5   :  { %v1352_v41 = vmul.f32 %v1344_v11, %v1336_v60 }
 0x5e7   :  { %v1360_v35 = vsub.f32 %v1352_v41, %v1143_v54 }
 0x5e9   :  { %v1640_v43 = vadd.f32 -0.9189385, %v1360_v35 }
 0x5eb   :  { %v1791_v34 = vpop.eup %1790  ;;  %v1376_v45 = vadd.f32 %v1640_v43, %v2325_v12 }
 0x5ec   :  { %v1793_v5 = vpop.eup %1792 }
 0x5ed   :  { %v1382_v9 = vmax.f32 %v1380_v39, %v1376_v45  ;;  %v1395_v30 = vadd.f32 %v1793_v5, %v1791_v34  ;;  %v1795_v38 = vpop.eup %1794 }
 0x5ee   :  { %v1797_v0 = vpop.eup %1796 }
 0x5ef   :  { %v1406_v19 = vsub.f32 %v1376_v45, %v1382_v9  ;;  %v1384_v46 = vsub.f32 %v2520_v61, %v1382_v9  ;;  %v1390_v36 = vsub.f32 %v1372_v13, %v1382_v9  ;;  %v1398_v48 = vsub.f32 %v1374_v32, %v1382_v9 }
 0x5f0   :  { %v1403_v50 = vadd.f32 %v1795_v38, %v1395_v30 }
 0x5f1   :  { %v1387_v59 = vmul.f32 1.442695, %v1384_v46  ;;  %v1393_v10 = vmul.f32 1.442695, %v1390_v36  ;;  %v1401_v42 = vmul.f32 1.442695, %v1398_v48 }
 0x5f2   :  { %v1411_v28 = vadd.f32 %v1797_v0, %v1403_v50  ;;  %v1409_v37 = vmul.f32 1.442695, %v1406_v19 }
 0x5f3   :  { %1798 = vpow2.f32 %v1387_v59 }
 0x5f4   :  { %1800 = vpow2.f32 %v1393_v10 }
 0x5f5   :  { %1802 = vpow2.f32 %v1401_v42 }
 0x5f6   :  { %1804 = vlog2.f32 %v1411_v28 }
 0x5f7   :  { %1806 = vpow2.f32 %v1409_v37 }
 0x5fd   :  { %v1799_v12 = vpop.eup %1798 }
 0x5fe   :  { %v1801_v2 = vpop.eup %1800 }
 0x5ff   :  { %v1803_v22 = vpop.eup %1802  ;;  %v1396_v24 = vadd.f32 %v1801_v2, %v1799_v12 }
 0x600   :  { %v1805_v7 = vpop.eup %1804 }
 0x601   :  { %v1404_v61 = vadd.f32 %v1803_v22, %v1396_v24  ;;  %v1414_v20 = vmul.f32 0.6931472, %v1805_v7  ;;  %v1807_v29 = vpop.eup %1806 }
 0x603   :  { %v1412_v3 = vadd.f32 %v1807_v29, %v1404_v61  ;;  %v1417_v56 = vadd.f32 %v1414_v20, %v1381_v14 }
 0x605   :  { %1808 = vlog2.f32 %v1412_v3  ;;  %v1461_v49 = vsub.f32 %v1417_v56, %v2422_v21 }
 0x60f   :  { %v1809_v13 = vpop.eup %1808 }
 0x610   :  { %v1416_v1 = vmul.f32 0.6931472, %v1809_v13 }
 0x612   :  { %v1418_v17 = vadd.f32 %v1416_v1, %v1382_v9 }
 0x614   :  { %v1462_v6 = vsub.f32 %v1418_v17, %v2431_v18  ;;  %v2598_v18 = vlaneseq }
 0x616   :  { %1469 = vmatprep.subr.mxu0 %v1462_v6  ;;  %vm1560_vm0 = vcmp.lt.s32.totalorder %v2598_v18, 256 }
 0x617   :  { %1470 = vmatpush1.msra.mxu0 %v1461_v49 }
 0x618   :  { %1642 = vmatmul.mubr.msk.f32.vlgmr.msra.gmra.mrb[36].mxu0 %vm1465_vm15, %v1641_v53 }
 0x6eb   :  { %v1535_v27 = vpop.f32.mrb[36].mxu0 }
 0x6ec   :  { %v1537_v21 = vpop.f32.mrb[37].mxu0 }
 0x6ed   :  { %v1542_v32 = vcombine.low %v1535_v27, %v1537_v21 }
 0x6ef   :  { %v1549_v57 = vrot.slane %v1542_v32, %v1548_v8 }
 0x6f1   :  { %v1556_v39 = vrot.slane %v1549_v57, %v1548_v8 }
 0x6f3   :  { %1562 = vst.msk [vmem:[#allocation2] sm:$0x3] %vm1560_vm0, %v1556_v39 }
 0x6f4   :  { %1821 = shalt.err (!%p1818_p4)
}
 0x6f5   :  { %s1822_s4 = scalar_lea.hbm %s2569_s9, 32 }
 0x6f6   :  { %p1823_p5 = scmp.ne.s32.totalorder %s2569_s9, %s1822_s4  ;;  %p1826_p6 = scmp.lt.u32.totalorder %s1822_s4, %s2569_s9 }
 0x6f8   :  { %p1828_p7 = pnand %p1826_p6, %p1823_p5 }
 0x6fa   :  { %1831 = shalt.err (!%p1828_p7)
}
 0x6fb   :  { %1572 = dma.vmem_to_hbm [thread:$0]  %s1570_s15, 32, %s2569_s9, [#allocation3]  }
 0x6fc   :  { %1832 = dma.done.wait [#allocation3], 32  }
 0x6fd   :  { %1833 = vsyncadd [#allocation3], 4294967264 }
 0x6fe   :  { %1576 = vsyncpa [#allocation3], 1 }

</bundles_post_ra>
